<compile_context>
chip_gen: v6e
topology: v6e:2x2x1
jax: 0.10.0
libtpu: 0.0.40
codegen_flags: <defaults>
</compile_context>

<pallas_src>
import jax
import jax.numpy as jnp
from jax.experimental import pallas as pl
from jax.experimental.pallas import tpu as pltpu


# ----------------------------- Pallas kernel --------------------------------

def projection_disc_kernel(
    # scalar-prefetch refs (SMEM)
    coef_sw_ref,        # (L,)  = clamp(d, 1)**(-1/beta) * sum(Wa)   (float32)
    ba_ref,             # (1,)  = A-head bias                        (float32)
    # tiled / resident VMEM inputs
    x_ref,              # (tile_b, D)   mm_dtype
    t_ref,              # (tile_b, H)   float32,  t = y @ Wv   (per batch tile)
    s_ref,              # (tile_b, 1)   float32,  s = y @ bv   (per batch tile)
    wphi_ref,           # (D, H)        mm_dtype
    bphi_ref,           # (1, H)        float32
    wpsi_ref,           # (H, H)        mm_dtype
    bpsi_ref,           # (1, H)        float32
    wa_ref,             # (1, H)        float32
    # output
    out_ref,            # (tile_b, 1)   float32
):
    l = pl.program_id(1)                       # distance index (inner grid axis)

    # phi = relu(x @ Wphi + bphi)                               -> (tb, H)
    phi = jnp.dot(x_ref[...], wphi_ref[...], preferred_element_type=jnp.float32)
    phi = jnp.maximum(phi + bphi_ref[...], 0.0)

    # psi = relu(phi @ Wpsi + bpsi)                             -> (tb, H)
    psi = jnp.dot(phi.astype(wpsi_ref.dtype), wpsi_ref[...],
                  preferred_element_type=jnp.float32)
    psi = jnp.maximum(psi + bpsi_ref[...], 0.0)

    # Folded V branch (y never enters the kernel):
    #   projection[n] = <y[b], V(phi[n])> = <phi[n], Wv^T y[b]> + <y[b], bv>
    #                 = sum(phi * t, -1) + s                    -> (tb, 1)
    projection = jnp.sum(phi * t_ref[...], axis=-1, keepdims=True) + s_ref[...]

    # Folded A head (VPU/XLU reduction instead of a 1-lane MXU matmul):
    #   A(coef*proj + psi) = coef*sum(Wa)*proj + sum(psi*Wa, -1) + ba
    head = jnp.sum(psi * wa_ref[...], axis=-1, keepdims=True)   # (tb, 1)
    out_ref[...] = coef_sw_ref[l] * projection + head + ba_ref[0]


# ------------------------------ wrapper / glue -------------------------------

def _pick_tile_b(B, *, sublane=16, max_rows=256):
    """Largest multiple of `sublane` dividing B, capped at max_rows.  Prefers a
    tile that leaves >= 2 batch tiles so the parallel grid axis can feed both
    v7x TensorCores."""
    assert B % sublane == 0, "batch_size must be a multiple of the sublane tile"
    cands = [tb for tb in range(sublane, min(B, max_rows) + 1, sublane)
             if B % tb == 0]
    if not cands:
        return B
    multi = [tb for tb in cands if B // tb >= 2]
    return max(multi) if multi else max(cands)


def _vmem_limit_bytes():
    """Generation-aware VMEM budget (v5e/v6e: 128 MiB physical, v7x: 64 MiB)."""
    try:
        cap = pltpu.get_tpu_info().vmem_capacity_bytes
    except Exception:
        cap = 64 * 1024 * 1024          # conservative fallback (v7x-sized)
    return min(int(cap * 3 // 4), 100 * 1024 * 1024)


def projection_disc_forward(x, y, distances, params, *, tile_b=None,
                            mm_dtype=jnp.bfloat16):
    """Pallas implementation of ProjectionDisc.forward.

    x: (N, D) float32, y: (B, D) float32, distances: (L,), N = L * B.
    Returns (L, B, 1) float32.

    mm_dtype: dtype of the MXU operands (x, Wphi, Wpsi).  bfloat16 is the
    native MXU format on every TPU generation; accumulation and all
    elementwise/reduction math stay float32.
    """
    L = int(distances.shape[0])
    B, D = y.shape
    N = x.shape[0]
    assert N == L * B and x.shape[1] == D
    H = params["wphi_t"].shape[1]

    sublane = 16 if jnp.dtype(mm_dtype).itemsize < 4 else 8
    if tile_b is None:
        tile_b = _pick_tile_b(B, sublane=sublane)
    assert B % tile_b == 0 and tile_b % sublane == 0
    nbj = B // tile_b
    grid = (nbj, L)        # distance innermost: y-side blocks re-used for all L

    # --- scalar path (SMEM scalar prefetch; one scalar read per grid step) ---
    beta = params["beta"].astype(jnp.float32)[0]
    d = jnp.maximum(distances.astype(jnp.float32), 1.0)        # clamp BEFORE pow
    coef = d ** (-1.0 / beta)                                   # (L,)
    # Wa stays float32 everywhere so both halves of the folded A head see the
    # exact same rounding of the weights.
    wa = params["wa"].astype(jnp.float32)                       # (1, H)
    coef_sum_wa = (coef * jnp.sum(wa)).astype(jnp.float32)      # (L,)
    ba = params["ba"].reshape(1).astype(jnp.float32)            # (1,)

    # --- fold the V branch onto the y side (amortized over all L distances) --
    y32 = y.astype(jnp.float32)
    t = y32 @ params["wv"].astype(jnp.float32)                  # (B, H)
    s = (y32 @ params["bv"].astype(jnp.float32))[:, None]       # (B, 1)

    # --- MXU operands in mm_dtype; biases / y-side operands stay float32 -----
    x_mm = x.astype(mm_dtype)
    wphi = params["wphi_t"].astype(mm_dtype)                    # (D, H)
    wpsi = params["wpsi_t"].astype(mm_dtype)                    # (H, H)
    bphi = params["bphi"].astype(jnp.float32)                   # (1, H)
    bpsi = params["bpsi"].astype(jnp.float32)                   # (1, H)

    # --- BlockSpecs (index_maps get the scalar-prefetch refs positionally) ---
    x_spec = pl.BlockSpec((tile_b, D), lambda j, l, *_: (l * nbj + j, 0))
    t_spec = pl.BlockSpec((tile_b, H), lambda j, l, *_: (j, 0))   # constant in l
    s_spec = pl.BlockSpec((tile_b, 1), lambda j, l, *_: (j, 0))   # -> DMA skipped
    out_spec = pl.BlockSpec((tile_b, 1), lambda j, l, *_: (l * nbj + j, 0))

    mmb = jnp.dtype(mm_dtype).itemsize
    cost = pl.CostEstimate(
        flops=2 * N * D * H + 2 * N * H * H + 6 * N * H,
        transcendentals=0,
        bytes_accessed=int(mmb * N * D                 # x streamed once
                           + 4 * B * (H + 1)           # t, s once per batch tile
                           + mmb * (D * H + H * H)     # resident weights
                           + 4 * (3 * H + L + 2)       # biases, Wa, coef, ba
                           + 4 * N),                   # output
    )

    def build(single_buffer_weights):
        def resident(r, c):
            # Resident operands: block index never changes, so one buffer is
            # enough -- halves their VMEM footprint (matters most on v7x).
            if single_buffer_weights:
                return pl.BlockSpec((r, c), lambda j, l, *_: (0, 0),
                                    pipeline_mode=pl.Buffered(1))
            return pl.BlockSpec((r, c), lambda j, l, *_: (0, 0))

        return pl.pallas_call(
            projection_disc_kernel,
            out_shape=jax.ShapeDtypeStruct((N, 1), jnp.float32),
            grid_spec=pltpu.PrefetchScalarGridSpec(
                num_scalar_prefetch=2,
                grid=grid,
                in_specs=[
                    x_spec,                 # x
                    t_spec,                 # t = y @ Wv
                    s_spec,                 # s = y @ bv
                    resident(D, H),         # Wphi^T
                    resident(1, H),         # bphi
                    resident(H, H),         # Wpsi^T
                    resident(1, H),         # bpsi
                    resident(1, H),         # Wa
                ],
                out_specs=out_spec,
            ),
            compiler_params=pltpu.CompilerParams(
                dimension_semantics=("parallel", "parallel"),
                vmem_limit_bytes=_vmem_limit_bytes(),
            ),
            cost_estimate=cost,
        )

    args = (coef_sum_wa, ba, x_mm, t, s, wphi, bphi, wpsi, bpsi, wa)
    want_single_buffer = hasattr(pl, "Buffered")
    try:
        out = build(want_single_buffer)(*args)
    except Exception:
        if not want_single_buffer:
            raise
        # pipeline_mode not supported by this JAX/Mosaic build: fall back to
        # default double-buffered resident weights (correctness unaffected).
        out = build(False)(*args)

    return out.reshape(L, B, 1)


# ----------------------- parameter setup (deterministic) ---------------------

def _spectral_normalize(w, key, n_iter=30, eps=1e-12):
    """Approximate torch.nn.utils.spectral_norm parameterization (power iteration).
    w: (out, in) torch-style Linear weight.  Returns w / sigma_max(w)."""
    u = jax.random.normal(key, (w.shape[0],), dtype=jnp.float32)
    u = u / (jnp.linalg.norm(u) + eps)
    v = None
    for _ in range(n_iter):
        v = w.T @ u
        v = v / (jnp.linalg.norm(v) + eps)
        u = w @ v
        u = u / (jnp.linalg.norm(u) + eps)
    sigma = u @ (w @ v)
    return w / sigma


def init_params(key, input_dim):
    D = input_dim
    H = 2 * input_dim     # "dimension" in the torch module
    keys = jax.random.split(key, 12)

    def linear(wkey, bkey, skey, fan_in, fan_out):
        bound = 1.0 / jnp.sqrt(fan_in)
        w = jax.random.uniform(wkey, (fan_out, fan_in), jnp.float32, -bound, bound)
        b = jax.random.uniform(bkey, (fan_out,), jnp.float32, -bound, bound)
        w = _spectral_normalize(w, skey)   # spectral_norm=True on every LinearLayer
        return w, b

    w_phi, b_phi = linear(keys[0], keys[1], keys[2], D, H)     # (H, D)
    w_psi, b_psi = linear(keys[3], keys[4], keys[5], H, H)     # (H, H)
    w_v, b_v = linear(keys[6], keys[7], keys[8], H, D)         # (D, H)
    w_a, b_a = linear(keys[9], keys[10], keys[11], H, 1)       # (1, H)

    return {
        "wphi_t": w_phi.T,              # (D, H)
        "bphi": b_phi[None, :],         # (1, H)
        "wpsi_t": w_psi.T,              # (H, H)
        "bpsi": b_psi[None, :],         # (1, H)
        "wv": w_v,                      # (D, H)  -- torch layout (out, in)
        "bv": b_v,                      # (D,)
        "wa": w_a,                      # (1, H)
        "ba": b_a,                      # (1,)
        "beta": jnp.array([5.0], dtype=jnp.float32),   # torch.ones(1) * 5
    }


# ------------------------------ pure-JAX reference ---------------------------

def reference_forward(x, y, distances, params, *, mm_dtype=jnp.float32):
    """Pure-JAX reference mirroring the torch module.  When mm_dtype=bfloat16
    it applies the same MXU-operand casts as the kernel (for a tight numeric
    comparison) while keeping f32 accumulation."""
    L, B = int(distances.shape[0]), y.shape[0]
    beta = params["beta"].astype(jnp.float32)[0]
    d = jnp.maximum(distances.astype(jnp.float32), 1.0)        # torch .clamp(1)

    phi = jnp.dot(x.astype(mm_dtype), params["wphi_t"].astype(mm_dtype),
                  preferred_element_type=jnp.float32) + params["bphi"]
    phi = jax.nn.relu(phi)
    v_out = phi @ params["wv"].T + params["bv"]                # V(phi), float32
    psi = jnp.dot(phi.astype(mm_dtype), params["wpsi_t"].astype(mm_dtype),
                  preferred_element_type=jnp.float32) + params["bpsi"]
    psi = jax.nn.relu(psi)

    y_rep = jnp.tile(y, (L, 1))
    projection = jnp.sum(y_rep * v_out, axis=-1, keepdims=True)
    coef = d ** (-1.0 / beta)
    coef = jnp.repeat(coef, B)[:, None]
    out = (coef * projection + psi) @ params["wa"].T + params["ba"]
    return out.reshape(L, B, 1)


# ----------------------------------- main ------------------------------------

if __name__ == "__main__":
    key = jax.random.PRNGKey(0)
    k_param, k_x, k_y = jax.random.split(key, 3)

    # Small but lane-aligned demo shapes (D multiple of 128, batch multiple of 16).
    input_dim = 128        # D  -> hidden H = 256
    batch_size = 64        # B  -> tile_b = 32, 2 batch tiles (both v7x TCs fed)
    num_dist = 4           # L
    N = num_dist * batch_size

    params = init_params(k_param, input_dim)

    x = jax.random.normal(k_x, (N, input_dim), dtype=jnp.float32)
    y = jax.random.normal(k_y, (batch_size, input_dim), dtype=jnp.float32)
    distances = jnp.array([0.5, 1.0, 2.0, 4.0], dtype=jnp.float32)  # 0.5 hits clamp(1)

    out = projection_disc_forward(x, y, distances, params)   # bf16 MXU default
    out = jax.block_until_ready(out)
    assert out.shape == (num_dist, batch_size, 1)

    # Tight check against a reference that uses the same bf16 MXU-operand casts.
    ref_matched = reference_forward(x, y, distances, params, mm_dtype=jnp.bfloat16)
    assert jnp.allclose(out, ref_matched, atol=5e-3, rtol=5e-3), \
        "mismatch vs precision-matched reference"

    # Loose semantic check against the pure-float32 module reference.
    ref_f32 = reference_forward(x, y, distances, params, mm_dtype=jnp.float32)
    assert jnp.allclose(out, ref_f32, atol=3e-1, rtol=1e-1), \
        "mismatch vs float32 reference"

    print("KERNEL_OK")
</pallas_src>

<mosaic_0001>
module attributes {stable_mosaic.version = 11 : i64} {
  func.func @projection_disc_kernel(%arg0: i32, %arg1: i32, %arg2: memref<4xf32, #tpu.memory_space<smem>>, %arg3: memref<1xf32, #tpu.memory_space<smem>>, %arg4: memref<32x128xbf16, #tpu.memory_space<vmem>>, %arg5: memref<32x256xf32, #tpu.memory_space<vmem>>, %arg6: memref<32x1xf32, #tpu.memory_space<vmem>>, %arg7: memref<128x256xbf16, #tpu.memory_space<vmem>>, %arg8: memref<1x256xf32, #tpu.memory_space<vmem>>, %arg9: memref<256x256xbf16, #tpu.memory_space<vmem>>, %arg10: memref<1x256xf32, #tpu.memory_space<vmem>>, %arg11: memref<1x256xf32, #tpu.memory_space<vmem>>, %arg12: memref<32x1xf32, #tpu.memory_space<vmem>>) attributes {dimension_semantics = [#tpu.dimension_semantics<parallel>, #tpu.dimension_semantics<parallel>], iteration_bounds = array<i64: 2, 4>, scalar_prefetch = 2 : i64, scratch_operands = 0 : i64, tpu.core_type = #tpu.core_type<tc>, window_params = [{transform_indices = @transform_0, window_bounds = array<i64: 32, 128>}, {transform_indices = @transform_1, window_bounds = array<i64: 32, 256>}, {transform_indices = @transform_2, window_bounds = array<i64: 32, 1>}, {pipeline_mode = #tpu.pipeline_mode<synchronous>, transform_indices = @transform_3, window_bounds = array<i64: 128, 256>}, {pipeline_mode = #tpu.pipeline_mode<synchronous>, transform_indices = @transform_4, window_bounds = array<i64: 1, 256>}, {pipeline_mode = #tpu.pipeline_mode<synchronous>, transform_indices = @transform_5, window_bounds = array<i64: 256, 256>}, {pipeline_mode = #tpu.pipeline_mode<synchronous>, transform_indices = @transform_6, window_bounds = array<i64: 1, 256>}, {pipeline_mode = #tpu.pipeline_mode<synchronous>, transform_indices = @transform_7, window_bounds = array<i64: 1, 256>}, {transform_indices = @transform_8, window_bounds = array<i64: 32, 1>}]} {
    %c0 = arith.constant 0 : index
    %c0_0 = arith.constant 0 : index
    %0 = vector.load %arg4[%c0, %c0_0] : memref<32x128xbf16, #tpu.memory_space<vmem>>, vector<32x128xbf16>
    %c0_1 = arith.constant 0 : index
    %c0_2 = arith.constant 0 : index
    %1 = vector.load %arg7[%c0_1, %c0_2] : memref<128x256xbf16, #tpu.memory_space<vmem>>, vector<128x256xbf16>
    %cst = arith.constant dense<0.000000e+00> : vector<32x256xf32>
    %2 = tpu.matmul %0, %1, %cst {dimension_numbers = #tpu.dot_dimension_numbers<[1], [0], [0], [1], [0, 0, 1, 1], [], []>} : vector<32x128xbf16>, vector<128x256xbf16>, vector<32x256xf32> -> vector<32x256xf32>
    %c0_3 = arith.constant 0 : index
    %c0_4 = arith.constant 0 : index
    %3 = vector.load %arg8[%c0_3, %c0_4] : memref<1x256xf32, #tpu.memory_space<vmem>>, vector<1x256xf32>
    %4 = vector.broadcast %3 : vector<1x256xf32> to vector<32x256xf32>
    %5 = arith.addf %2, %4 : vector<32x256xf32>
    %cst_5 = arith.constant 0.000000e+00 : f32
    %6 = vector.broadcast %cst_5 : f32 to vector<32x256xf32>
    %7 = arith.maximumf %5, %6 : vector<32x256xf32>
    %8 = arith.truncf %7 : vector<32x256xf32> to vector<32x256xbf16>
    %c0_6 = arith.constant 0 : index
    %c0_7 = arith.constant 0 : index
    %9 = vector.load %arg9[%c0_6, %c0_7] : memref<256x256xbf16, #tpu.memory_space<vmem>>, vector<256x256xbf16>
    %cst_8 = arith.constant dense<0.000000e+00> : vector<32x256xf32>
    %10 = tpu.matmul %8, %9, %cst_8 {dimension_numbers = #tpu.dot_dimension_numbers<[1], [0], [0], [1], [0, 0, 1, 1], [], []>} : vector<32x256xbf16>, vector<256x256xbf16>, vector<32x256xf32> -> vector<32x256xf32>
    %c0_9 = arith.constant 0 : index
    %c0_10 = arith.constant 0 : index
    %11 = vector.load %arg10[%c0_9, %c0_10] : memref<1x256xf32, #tpu.memory_space<vmem>>, vector<1x256xf32>
    %12 = vector.broadcast %11 : vector<1x256xf32> to vector<32x256xf32>
    %13 = arith.addf %10, %12 : vector<32x256xf32>
    %cst_11 = arith.constant 0.000000e+00 : f32
    %14 = vector.broadcast %cst_11 : f32 to vector<32x256xf32>
    %15 = arith.maximumf %13, %14 : vector<32x256xf32>
    %c0_12 = arith.constant 0 : index
    %c0_13 = arith.constant 0 : index
    %16 = vector.load %arg5[%c0_12, %c0_13] : memref<32x256xf32, #tpu.memory_space<vmem>>, vector<32x256xf32>
    %17 = arith.mulf %7, %16 : vector<32x256xf32>
    %cst_14 = arith.constant dense<0.000000e+00> : vector<32xf32>
    %18 = vector.multi_reduction <add>, %17, %cst_14 [1] : vector<32x256xf32> to vector<32xf32>
    %19 = vector.shape_cast %18 : vector<32xf32> to vector<32x1xf32>
    %c0_15 = arith.constant 0 : index
    %c0_16 = arith.constant 0 : index
    %20 = vector.load %arg6[%c0_15, %c0_16] : memref<32x1xf32, #tpu.memory_space<vmem>>, vector<32x1xf32>
    %21 = arith.addf %19, %20 : vector<32x1xf32>
    %c0_17 = arith.constant 0 : index
    %c0_18 = arith.constant 0 : index
    %22 = vector.load %arg11[%c0_17, %c0_18] : memref<1x256xf32, #tpu.memory_space<vmem>>, vector<1x256xf32>
    %23 = vector.broadcast %22 : vector<1x256xf32> to vector<32x256xf32>
    %24 = arith.mulf %15, %23 : vector<32x256xf32>
    %cst_19 = arith.constant dense<0.000000e+00> : vector<32xf32>
    %25 = vector.multi_reduction <add>, %24, %cst_19 [1] : vector<32x256xf32> to vector<32xf32>
    %26 = vector.shape_cast %25 : vector<32xf32> to vector<32x1xf32>
    %27 = arith.index_cast %arg1 : i32 to index
    %28 = memref.load %arg2[%27] : memref<4xf32, #tpu.memory_space<smem>>
    %29 = vector.broadcast %28 : f32 to vector<32x1xf32>
    %30 = arith.mulf %29, %21 : vector<32x1xf32>
    %31 = arith.addf %30, %26 : vector<32x1xf32>
    %c0_20 = arith.constant 0 : index
    %32 = memref.load %arg3[%c0_20] : memref<1xf32, #tpu.memory_space<smem>>
    %33 = vector.broadcast %32 : f32 to vector<32x1xf32>
    %34 = arith.addf %31, %33 : vector<32x1xf32>
    %c0_21 = arith.constant 0 : index
    %c0_22 = arith.constant 0 : index
    %35 = vector.load %arg12[%c0_21, %c0_22] : memref<32x1xf32, #tpu.memory_space<vmem>>, vector<32x1xf32>
    tpu.vector_store %arg12[%c0_21, %c0_22], %34 {strides = array<i32>} : memref<32x1xf32, #tpu.memory_space<vmem>>, vector<32x1xf32>,
    return
  }
  func.func @transform_0(%arg0: i32, %arg1: i32, %arg2: memref<4xf32, #tpu.memory_space<smem>>, %arg3: memref<1xf32, #tpu.memory_space<smem>>) -> (i32, i32) {
    %c2_i32 = arith.constant 2 : i32
    %0 = arith.muli %arg1, %c2_i32 : i32
    %1 = arith.addi %0, %arg0 : i32
    %c0_i32 = arith.constant 0 : i32
    %c0_i32_0 = arith.constant 0 : i32
    return %1, %c0_i32 : i32, i32
  }
  func.func @transform_1(%arg0: i32, %arg1: i32, %arg2: memref<4xf32, #tpu.memory_space<smem>>, %arg3: memref<1xf32, #tpu.memory_space<smem>>) -> (i32, i32) {
    %c0_i32 = arith.constant 0 : i32
    %c0_i32_0 = arith.constant 0 : i32
    return %arg0, %c0_i32 : i32, i32
  }
  func.func @transform_2(%arg0: i32, %arg1: i32, %arg2: memref<4xf32, #tpu.memory_space<smem>>, %arg3: memref<1xf32, #tpu.memory_space<smem>>) -> (i32, i32) {
    %c0_i32 = arith.constant 0 : i32
    %c0_i32_0 = arith.constant 0 : i32
    return %arg0, %c0_i32 : i32, i32
  }
  func.func @transform_3(%arg0: i32, %arg1: i32, %arg2: memref<4xf32, #tpu.memory_space<smem>>, %arg3: memref<1xf32, #tpu.memory_space<smem>>) -> (i32, i32) {
    %c0_i32 = arith.constant 0 : i32
    %c0_i32_0 = arith.constant 0 : i32
    %c0_i32_1 = arith.constant 0 : i32
    return %c0_i32, %c0_i32_0 : i32, i32
  }
  func.func @transform_4(%arg0: i32, %arg1: i32, %arg2: memref<4xf32, #tpu.memory_space<smem>>, %arg3: memref<1xf32, #tpu.memory_space<smem>>) -> (i32, i32) {
    %c0_i32 = arith.constant 0 : i32
    %c0_i32_0 = arith.constant 0 : i32
    %c0_i32_1 = arith.constant 0 : i32
    return %c0_i32, %c0_i32_0 : i32, i32
  }
  func.func @transform_5(%arg0: i32, %arg1: i32, %arg2: memref<4xf32, #tpu.memory_space<smem>>, %arg3: memref<1xf32, #tpu.memory_space<smem>>) -> (i32, i32) {
    %c0_i32 = arith.constant 0 : i32
    %c0_i32_0 = arith.constant 0 : i32
    %c0_i32_1 = arith.constant 0 : i32
    return %c0_i32, %c0_i32_0 : i32, i32
  }
  func.func @transform_6(%arg0: i32, %arg1: i32, %arg2: memref<4xf32, #tpu.memory_space<smem>>, %arg3: memref<1xf32, #tpu.memory_space<smem>>) -> (i32, i32) {
    %c0_i32 = arith.constant 0 : i32
    %c0_i32_0 = arith.constant 0 : i32
    %c0_i32_1 = arith.constant 0 : i32
    return %c0_i32, %c0_i32_0 : i32, i32
  }
  func.func @transform_7(%arg0: i32, %arg1: i32, %arg2: memref<4xf32, #tpu.memory_space<smem>>, %arg3: memref<1xf32, #tpu.memory_space<smem>>) -> (i32, i32) {
    %c0_i32 = arith.constant 0 : i32
    %c0_i32_0 = arith.constant 0 : i32
    %c0_i32_1 = arith.constant 0 : i32
    return %c0_i32, %c0_i32_0 : i32, i32
  }
  func.func @transform_8(%arg0: i32, %arg1: i32, %arg2: memref<4xf32, #tpu.memory_space<smem>>, %arg3: memref<1xf32, #tpu.memory_space<smem>>) -> (i32, i32) {
    %c2_i32 = arith.constant 2 : i32
    %0 = arith.muli %arg1, %c2_i32 : i32
    %1 = arith.addi %0, %arg0 : i32
    %c0_i32 = arith.constant 0 : i32
    %c0_i32_0 = arith.constant 0 : i32
    return %1, %c0_i32 : i32, i32
  }
}

module attributes {stable_mosaic.version = 11 : i64} {
  func.func @projection_disc_kernel(%arg0: i32, %arg1: i32, %arg2: memref<4xf32, #tpu.memory_space<smem>>, %arg3: memref<1xf32, #tpu.memory_space<smem>>, %arg4: memref<32x128xbf16, #tpu.memory_space<vmem>>, %arg5: memref<32x256xf32, #tpu.memory_space<vmem>>, %arg6: memref<32x1xf32, #tpu.memory_space<vmem>>, %arg7: memref<128x256xbf16, #tpu.memory_space<vmem>>, %arg8: memref<1x256xf32, #tpu.memory_space<vmem>>, %arg9: memref<256x256xbf16, #tpu.memory_space<vmem>>, %arg10: memref<1x256xf32, #tpu.memory_space<vmem>>, %arg11: memref<1x256xf32, #tpu.memory_space<vmem>>, %arg12: memref<32x1xf32, #tpu.memory_space<vmem>>) attributes {dimension_semantics = [#tpu.dimension_semantics<parallel>, #tpu.dimension_semantics<parallel>], iteration_bounds = array<i64: 2, 4>, scalar_prefetch = 2 : i64, scratch_operands = 0 : i64, tpu.core_type = #tpu.core_type<tc>, window_params = [{transform_indices = @transform_0, window_bounds = array<i64: 32, 128>}, {transform_indices = @transform_1, window_bounds = array<i64: 32, 256>}, {transform_indices = @transform_2, window_bounds = array<i64: 32, 1>}, {pipeline_mode = #tpu.pipeline_mode<synchronous>, transform_indices = @transform_3, window_bounds = array<i64: 128, 256>}, {pipeline_mode = #tpu.pipeline_mode<synchronous>, transform_indices = @transform_4, window_bounds = array<i64: 1, 256>}, {pipeline_mode = #tpu.pipeline_mode<synchronous>, transform_indices = @transform_5, window_bounds = array<i64: 256, 256>}, {pipeline_mode = #tpu.pipeline_mode<synchronous>, transform_indices = @transform_6, window_bounds = array<i64: 1, 256>}, {pipeline_mode = #tpu.pipeline_mode<synchronous>, transform_indices = @transform_7, window_bounds = array<i64: 1, 256>}, {transform_indices = @transform_8, window_bounds = array<i64: 32, 1>}]} {
    %c0 = arith.constant 0 : index
    %c0_0 = arith.constant 0 : index
    %0 = vector.load %arg4[%c0, %c0_0] : memref<32x128xbf16, #tpu.memory_space<vmem>>, vector<32x128xbf16>
    %c0_1 = arith.constant 0 : index
    %c0_2 = arith.constant 0 : index
    %1 = vector.load %arg7[%c0_1, %c0_2] : memref<128x256xbf16, #tpu.memory_space<vmem>>, vector<128x256xbf16>
    %cst = arith.constant dense<0.000000e+00> : vector<32x256xf32>
    %2 = tpu.matmul %0, %1, %cst {dimension_numbers = #tpu.dot_dimension_numbers<[1], [0], [0], [1], [0, 0, 1, 1], [], []>} : vector<32x128xbf16>, vector<128x256xbf16>, vector<32x256xf32> -> vector<32x256xf32>
    %c0_3 = arith.constant 0 : index
    %c0_4 = arith.constant 0 : index
    %3 = vector.load %arg8[%c0_3, %c0_4] : memref<1x256xf32, #tpu.memory_space<vmem>>, vector<1x256xf32>
    %4 = vector.broadcast %3 : vector<1x256xf32> to vector<32x256xf32>
    %5 = arith.addf %2, %4 : vector<32x256xf32>
    %cst_5 = arith.constant 0.000000e+00 : f32
    %6 = vector.broadcast %cst_5 : f32 to vector<32x256xf32>
    %7 = arith.maximumf %5, %6 : vector<32x256xf32>
    %8 = arith.truncf %7 : vector<32x256xf32> to vector<32x256xbf16>
    %c0_6 = arith.constant 0 : index
    %c0_7 = arith.constant 0 : index
    %9 = vector.load %arg9[%c0_6, %c0_7] : memref<256x256xbf16, #tpu.memory_space<vmem>>, vector<256x256xbf16>
    %cst_8 = arith.constant dense<0.000000e+00> : vector<32x256xf32>
    %10 = tpu.matmul %8, %9, %cst_8 {dimension_numbers = #tpu.dot_dimension_numbers<[1], [0], [0], [1], [0, 0, 1, 1], [], []>} : vector<32x256xbf16>, vector<256x256xbf16>, vector<32x256xf32> -> vector<32x256xf32>
    %c0_9 = arith.constant 0 : index
    %c0_10 = arith.constant 0 : index
    %11 = vector.load %arg10[%c0_9, %c0_10] : memref<1x256xf32, #tpu.memory_space<vmem>>, vector<1x256xf32>
    %12 = vector.broadcast %11 : vector<1x256xf32> to vector<32x256xf32>
    %13 = arith.addf %10, %12 : vector<32x256xf32>
    %cst_11 = arith.constant 0.000000e+00 : f32
    %14 = vector.broadcast %cst_11 : f32 to vector<32x256xf32>
    %15 = arith.maximumf %13, %14 : vector<32x256xf32>
    %c0_12 = arith.constant 0 : index
    %c0_13 = arith.constant 0 : index
    %16 = vector.load %arg5[%c0_12, %c0_13] : memref<32x256xf32, #tpu.memory_space<vmem>>, vector<32x256xf32>
    %17 = arith.mulf %7, %16 : vector<32x256xf32>
    %cst_14 = arith.constant dense<0.000000e+00> : vector<32xf32>
    %18 = vector.multi_reduction <add>, %17, %cst_14 [1] : vector<32x256xf32> to vector<32xf32>
    %19 = vector.shape_cast %18 : vector<32xf32> to vector<32x1xf32>
    %c0_15 = arith.constant 0 : index
    %c0_16 = arith.constant 0 : index
    %20 = vector.load %arg6[%c0_15, %c0_16] : memref<32x1xf32, #tpu.memory_space<vmem>>, vector<32x1xf32>
    %21 = arith.addf %19, %20 : vector<32x1xf32>
    %c0_17 = arith.constant 0 : index
    %c0_18 = arith.constant 0 : index
    %22 = vector.load %arg11[%c0_17, %c0_18] : memref<1x256xf32, #tpu.memory_space<vmem>>, vector<1x256xf32>
    %23 = vector.broadcast %22 : vector<1x256xf32> to vector<32x256xf32>
    %24 = arith.mulf %15, %23 : vector<32x256xf32>
    %cst_19 = arith.constant dense<0.000000e+00> : vector<32xf32>
    %25 = vector.multi_reduction <add>, %24, %cst_19 [1] : vector<32x256xf32> to vector<32xf32>
    %26 = vector.shape_cast %25 : vector<32xf32> to vector<32x1xf32>
    %27 = arith.index_cast %arg1 : i32 to index
    %28 = memref.load %arg2[%27] : memref<4xf32, #tpu.memory_space<smem>>
    %29 = vector.broadcast %28 : f32 to vector<32x1xf32>
    %30 = arith.mulf %29, %21 : vector<32x1xf32>
    %31 = arith.addf %30, %26 : vector<32x1xf32>
    %c0_20 = arith.constant 0 : index
    %32 = memref.load %arg3[%c0_20] : memref<1xf32, #tpu.memory_space<smem>>
    %33 = vector.broadcast %32 : f32 to vector<32x1xf32>
    %34 = arith.addf %31, %33 : vector<32x1xf32>
    %c0_21 = arith.constant 0 : index
    %c0_22 = arith.constant 0 : index
    %35 = vector.load %arg12[%c0_21, %c0_22] : memref<32x1xf32, #tpu.memory_space<vmem>>, vector<32x1xf32>
    tpu.vector_store %arg12[%c0_21, %c0_22], %34 {strides = array<i32>} : memref<32x1xf32, #tpu.memory_space<vmem>>, vector<32x1xf32>,
    return
  }
  func.func @transform_0(%arg0: i32, %arg1: i32, %arg2: memref<4xf32, #tpu.memory_space<smem>>, %arg3: memref<1xf32, #tpu.memory_space<smem>>) -> (i32, i32) {
    %c2_i32 = arith.constant 2 : i32
    %0 = arith.muli %arg1, %c2_i32 : i32
    %1 = arith.addi %0, %arg0 : i32
    %c0_i32 = arith.constant 0 : i32
    %c0_i32_0 = arith.constant 0 : i32
    return %1, %c0_i32 : i32, i32
  }
  func.func @transform_1(%arg0: i32, %arg1: i32, %arg2: memref<4xf32, #tpu.memory_space<smem>>, %arg3: memref<1xf32, #tpu.memory_space<smem>>) -> (i32, i32) {
    %c0_i32 = arith.constant 0 : i32
    %c0_i32_0 = arith.constant 0 : i32
    return %arg0, %c0_i32 : i32, i32
  }
  func.func @transform_2(%arg0: i32, %arg1: i32, %arg2: memref<4xf32, #tpu.memory_space<smem>>, %arg3: memref<1xf32, #tpu.memory_space<smem>>) -> (i32, i32) {
    %c0_i32 = arith.constant 0 : i32
    %c0_i32_0 = arith.constant 0 : i32
    return %arg0, %c0_i32 : i32, i32
  }
  func.func @transform_3(%arg0: i32, %arg1: i32, %arg2: memref<4xf32, #tpu.memory_space<smem>>, %arg3: memref<1xf32, #tpu.memory_space<smem>>) -> (i32, i32) {
    %c0_i32 = arith.constant 0 : i32
    %c0_i32_0 = arith.constant 0 : i32
    %c0_i32_1 = arith.constant 0 : i32
    return %c0_i32, %c0_i32_0 : i32, i32
  }
  func.func @transform_4(%arg0: i32, %arg1: i32, %arg2: memref<4xf32, #tpu.memory_space<smem>>, %arg3: memref<1xf32, #tpu.memory_space<smem>>) -> (i32, i32) {
    %c0_i32 = arith.constant 0 : i32
    %c0_i32_0 = arith.constant 0 : i32
    %c0_i32_1 = arith.constant 0 : i32
    return %c0_i32, %c0_i32_0 : i32, i32
  }
  func.func @transform_5(%arg0: i32, %arg1: i32, %arg2: memref<4xf32, #tpu.memory_space<smem>>, %arg3: memref<1xf32, #tpu.memory_space<smem>>) -> (i32, i32) {
    %c0_i32 = arith.constant 0 : i32
    %c0_i32_0 = arith.constant 0 : i32
    %c0_i32_1 = arith.constant 0 : i32
    return %c0_i32, %c0_i32_0 : i32, i32
  }
  func.func @transform_6(%arg0: i32, %arg1: i32, %arg2: memref<4xf32, #tpu.memory_space<smem>>, %arg3: memref<1xf32, #tpu.memory_space<smem>>) -> (i32, i32) {
    %c0_i32 = arith.constant 0 : i32
    %c0_i32_0 = arith.constant 0 : i32
    %c0_i32_1 = arith.constant 0 : i32
    return %c0_i32, %c0_i32_0 : i32, i32
  }
  func.func @transform_7(%arg0: i32, %arg1: i32, %arg2: memref<4xf32, #tpu.memory_space<smem>>, %arg3: memref<1xf32, #tpu.memory_space<smem>>) -> (i32, i32) {
    %c0_i32 = arith.constant 0 : i32
    %c0_i32_0 = arith.constant 0 : i32
    %c0_i32_1 = arith.constant 0 : i32
    return %c0_i32, %c0_i32_0 : i32, i32
  }
  func.func @transform_8(%arg0: i32, %arg1: i32, %arg2: memref<4xf32, #tpu.memory_space<smem>>, %arg3: memref<1xf32, #tpu.memory_space<smem>>) -> (i32, i32) {
    %c2_i32 = arith.constant 2 : i32
    %0 = arith.muli %arg1, %c2_i32 : i32
    %1 = arith.addi %0, %arg0 : i32
    %c0_i32 = arith.constant 0 : i32
    %c0_i32_0 = arith.constant 0 : i32
    return %1, %c0_i32 : i32, i32
  }
}

</mosaic_0001>

<bundles_post_ra>
// kernel: tpu_custom_call.1
= control target key start
LH: loop header
LB: loop body
LE: loop exit
PB: predicated region body
PF: predicated region fallthrough
CT: control target
= control target key end

     0   :  { %s2012_s0 = inlined_call_operand.vmem [shape: f32[4], index: 0, kind: input, shape index: {}]   ;;  %s2013_s1 = inlined_call_operand.<no memory space> [shape: f32[1], index: 1, kind: input, shape index: {}]   ;;  %s2014_s2 = inlined_call_operand.hbm [shape: bf16[256,128], index: 2, kind: input, shape index: {}]   ;;  %s2015_s3 = inlined_call_operand.hbm [shape: f32[64,256], index: 3, kind: input, shape index: {}]   ;;  %s2016_s4 = inlined_call_operand.vmem [shape: f32[64,1], index: 4, kind: input, shape index: {}]   ;;  %s2017_s5 = inlined_call_operand.hbm [shape: bf16[128,256], index: 5, kind: input, shape index: {}]   ;;  %s2018_s6 = inlined_call_operand.vmem [shape: f32[1,256], index: 6, kind: input, shape index: {}]   ;;  %s2019_s7 = inlined_call_operand.hbm [shape: bf16[256,256], index: 7, kind: input, shape index: {}]   ;;  %s2020_s8 = inlined_call_operand.vmem [shape: f32[1,256], index: 8, kind: input, shape index: {}]   ;;  %s2021_s9 = inlined_call_operand.vmem [shape: f32[1,256], index: 9, kind: input, shape index: {}]   ;;  %s2022_s10 = inlined_call_operand.vmem [shape: f32[256,1], index: 10, kind: output, shape index: {}]  }
   0x1   :  { %2032 = sst [smem:[#allocation21_spill]] %s2014_s2  ;;  %s15_s15 = sshll.u32 %s2012_s0, 4  ;;  %s16_s15 = int_to_ptr.vmem [resolvable:$true] %s15_s15 }
   0x2   :  { %2033 = sst [smem:[#allocation22_spill]] %s2016_s4  ;;  %s1431_s18 = scalar_lea.vmem %s16_s15, 16 }
   0x3   :  { %2034 = sst [smem:[#allocation23_spill]] %s2017_s5  ;;  %p1432_p0 = scmp.ne.s32.totalorder %s16_s15, %s1431_s18 }
   0x4   :  { %2035 = sst [smem:[#allocation24_spill]] %s2019_s7  ;;  %p1436_p1 = scmp.lt.s32.totalorder %s16_s15, %s16_s15 }
   0x5   :  { %2036 = sst [smem:[#allocation25_spill]] %s2020_s8  ;;  %p1437_p2 = scmp.lt.s32.totalorder %s1431_s18, %s1431_s18 }
   0x6   :  { %2037 = sst [smem:[#allocation26_spill]] %s2021_s9 }
   0x7   :  { %2038 = sst [smem:[#allocation27_spill]] %s2022_s10  ;;  %p1438_p3 = por %p1437_p2, %p1436_p1 }
   0x8   :  { %19 = sst [smem:[#allocation4]] %s2013_s1 }
   0x9   :  { %p1439_p4 = pnand %p1438_p3, %p1432_p0 }
   0xb   :  { %1442 = shalt.err (!%p1439_p4)  }
   0xc   :  { %s1657_s19 = smov [#allocation3]  }
   0xd   :  { %18 = dma.vmem_to_smem %s16_s15, 16, %s1657_s19, [#allocation2] }
   0xe   :  { %1595 = dma.done.wait [#allocation2], 16 }
   0xf   :  { %1596 = vsyncadd [#allocation2], 4294967280 }
  0x10   :  { %21 = sfence }
  0x11   :  { %22 = vsyncpa [#allocation6], 0 }
  0x12   :  { %24 = vsyncpa [#allocation6 + $0x1], 0 }
  0x13   :  { %25 = vsyncpa [#allocation8], 0 }
  0x14   :  { %27 = vsyncpa [#allocation8 + $0x1], 0 }
  0x15   :  { %28 = vsyncpa [#allocation11], 0  ;;  %s1730_s0 = smov 0   ;;  %s1732_s1 = smov 0  }
  0x16   :  { %s1734_s20 = smov 0   ;;  %s1736_s21 = smov 0  }
  0x17   :  { %s1738_s22 = smov 0   ;;  %s1740_s23 = smov 0  }
  0x18   :  { %s1742_s24 = smov 0   ;;  %s1744_s25 = smov 0  }
  0x19   :  { %s1746_s26 = smov 0   ;;  %s1748_s27 = smov 0  }
  0x1a   :  { %s1750_s28 = smov 0  }
  0x1b LB: > { %2039 = sst [smem:[#allocation17_spill]] %s1639_s24  ;;  %s2023_s29 = sadd.s32 4294967295, %s1655_s28   ;;  %s1655_s28 = sphi %s1750_s28, %s34_s28   ;;  %s1651_s27 = sphi %s1748_s27, %s2076_s27   ;;  %s1647_s26 = sphi %s1746_s26, %s2075_s26   ;;  %s1643_s25 = sphi %s1744_s25, %s2074_s25   ;;  %s1639_s24 = sphi %s1742_s24, %s2066_s24   ;;  %s1635_s23 = sphi %s1740_s23, %s2073_s23   ;;  %s1631_s22 = sphi %s1738_s22, %s2072_s22   ;;  %s1627_s21 = sphi %s1736_s21, %s2071_s21   ;;  %s1623_s20 = sphi %s1734_s20, %s2070_s20   ;;  %s1619_s1 = sphi %s1732_s1, %s2069_s1   ;;  %s1615_s0 = sphi %s1730_s0, %s2068_s0  }
  0x1c   : > { %2040 = sst [smem:[#allocation18_spill]] %s1643_s25  ;;  %p70_p5 = scmp.ne.s32.totalorder %s1631_s22, %s1627_s21 }
  0x1d   : > { %2041 = sst [smem:[#allocation19_spill]] %s1647_s26  ;;  %p1785_p6 = scmp.eq.s32.totalorder %s2023_s29, 0 }
  0x1e   : > { %p96_p7 = scmp.ne.s32.totalorder %s1619_s1, %s1615_s0  ;;  %p1151_p8 = scmp.ge.s32.totalorder %s1655_s28, 1 }
  0x1f   : > { %s2042_s30 = scalar_select %p1785_p6, 1, 0 }
  0x20   : > { %p268_p9 = scmp.lt.s32.totalorder %s1655_s28, 9  ;;  %p1794_p10 = por %p1785_p6, %p70_p5 }
  0x21   : > { %p1800_p11 = por %p96_p7, %p1785_p6  ;;  %s1658_s14 = smov [#allocation9]  }
  0x22   : > { %p1804_p12 = pnand %p1151_p8, %p268_p9  ;;  %s280_s15 = sshll.u32 %s1658_s14, 4  ;;  %s281_s15 = int_to_ptr.vmem [resolvable:$true] %s280_s15 }
  0x23   : > { %s2044_s12 = scalar_select %p1800_p11, 1, 0 }
  0x24   : > { %p1240_p13 = pneg %p1804_p12  ;;  %s1659_s17 = smov [#allocation10]  }
  0x25   : > { %s296_s18 = sshll.u32 %s1659_s17, 4  ;;  %s1454_s19 = scalar_lea.vmem %s281_s15, 2048  ;;  %s297_s18 = int_to_ptr.vmem [resolvable:$true] %s296_s18 }
  0x26   : > { %p1812_p0 = pnand %p1240_p13, %p1785_p6  ;;  %p1455_p2 = scmp.ne.s32.totalorder %s281_s15, %s1454_s19 }
  0x27   : > { %p1462_p5 = scmp.lt.s32.totalorder %s281_s15, %s281_s15  ;;  %p1463_p7 = scmp.lt.s32.totalorder %s1454_s19, %s1454_s19 }
  0x28   : > { %p1445_p1 = pneg %p1812_p0 }
  0x29   : > { %p1464_p8 = por %p1463_p7, %p1462_p5 }
  0x2a   : > { %p1457_p3 = pnand %p1455_p2, %p1445_p1 }
  0x2c   : > { %p1458_p4 = pneg %p1457_p3 }
  0x2e   : > { %p1465_p9 = pnand %p1464_p8, %p1458_p4 }
  0x30   : > { %1468 = shalt.err (!%p1465_p9)
}
  0x31   : > { %s1660_s0 = smov 128   ;;  %s1661_s21 = smov 8  }
  0x32   : > { %s2047_s5 = sld [smem:[#allocation23_spill]]  ;;  %s1480_s29 = scalar_lea.vmem %s297_s18, 4096 }
  0x33   : > { %p1481_p13 = scmp.ne.s32.totalorder %s297_s18, %s1480_s29  ;;  %p1488_p6 = scmp.lt.s32.totalorder %s297_s18, %s297_s18 }
  0x34   : > { %p1489_p5 = scmp.lt.s32.totalorder %s1480_s29, %s1480_s29 }
  0x35   : > { %p1483_p2 = pnand %p1481_p13, %p1445_p1 }
  0x36   : > { %p1490_p4 = por %p1489_p5, %p1488_p6 }
  0x37   : > { %p1484_p3 = pneg %p1483_p2 }
  0x38   : > { %1243 = dma.hbm_to_vmem [thread:$0]  (!%p1812_p0), %s2047_s5, 2048, %s281_s15, [#allocation8], %s1660_s0, %s1660_s0, %s1661_s21  }
  0x39   : > { %p1491_p7 = pnand %p1490_p4, %p1484_p3 }
  0x3b   : > { %1494 = shalt.err (!%p1491_p7)
}
  0x3c   : > { %s2048_s7 = sld [smem:[#allocation24_spill]]  ;;  %s43_s29 = sadd.s32 1, %s1647_s26 }
  0x3d   : > { %s46_s15 = sadd.s32 1, %s1651_s27  ;;  %p44_p6 = scmp.ge.s32.totalorder %s43_s29, 4 }
  0x3e   : > { %s1147_s16 = sshll.u32 %s1647_s26, 1  ;;  %s57_s10 = sadd.s32 1, %s1635_s23 }
  0x3f   : > { %s51_s14 = sadd.s32 %s1651_s27, %s1147_s16  ;;  %s2078_s29 = smov (%p44_p6, %s43_s29), 0 }
  0x40   : > { %2049 = sst [smem:[#allocation20_spill]] %s2078_s29  ;;  %s2080_s15 = smov (!%p44_p6, %s46_s15), %s1651_s27 }
  0x41   : > { %s1148_s17 = sshll.u32 %s2078_s29, 1  ;;  %p64_p1 = scmp.ne.s32.totalorder %s1635_s23, %s1631_s22 }
  0x42   : > { %1246 = dma.hbm_to_vmem [thread:$0]  (!%p1812_p0), %s2048_s7, 4096, %s297_s18, [#allocation11], %s1660_s0, %s1660_s0, %s1661_s21  }
  0x43   : > { %p48_p8 = scmp.ge.s32.totalorder %s2080_s15, 2  ;;  %p2030_p9 = scmp.eq.s32.totalorder %s1655_s28, 0 }
  0x44   : > { %p1256_p13 = scmp.lt.s32.totalorder %s1655_s28, 8  ;;  %s316_s18 = sand.u32 1, %s1635_s23  }
  0x45   : > { %s2082_s15 = smov (%p48_p8, %s2080_s15), 0  ;;  %p1852_p0 = por %p2030_p9, %p64_p1 }
  0x46   : > { %s53_s21 = sadd.s32 %s1148_s17, %s2082_s15  ;;  %s80_s19 = ssub.s32 %s1651_s27, %s2082_s15 }
  0x47   : > { %s54_s16 = ssub.s32 %s51_s14, %s53_s21  ;;  %p1859_p2 = scmp.eq.s32.totalorder %s80_s19, 0 }
  0x48   : > { %p55_p3 = scmp.eq.s32.totalorder %s54_s16, 0  ;;  %s1155_s7 = sshll.u32 %s316_s18, 4 }
  0x49   : > { %s1225_s29 = sshll.u32 %s51_s14, 8  ;;  %s2052_s2 = sld [smem:[#allocation21_spill]] }
  0x4a   : > { %s1864_s26 = scalar_select %p55_p3, %s1635_s23, %s57_s10  }
  0x4b   : > { %s320_s9 = scalar_lea.vmem [#allocation5], %s1155_s7  ;;  %p1873_p5 = pnand %p1256_p13, %p1852_p0 }
  0x4c   : > { %s329_s8 = sshll.u32 %s320_s9, 4  ;;  %s317_s21 = scalar_lea.sflag [#allocation6], %s316_s18  ;;  %s330_s8 = int_to_ptr.vmem [resolvable:$true] %s329_s8 }
  0x4d   : > { %p1497_p4 = pneg %p1873_p5  ;;  %s1508_s14 = scalar_lea.vmem %s330_s8, 256 }
  0x4e   : > { %p1509_p7 = scmp.ne.s32.totalorder %s330_s8, %s1508_s14  ;;  %s1662_s10 = smov [#allocation5]  }
  0x4f   : > { %s328_s25 = scalar_lea.hbm %s2052_s2, %s1225_s29  ;;  %s1513_s4 = sshll.u32 %s1662_s10, 4  ;;  %s1514_s4 = int_to_ptr.vmem [resolvable:$false] %s1513_s4 }
  0x50   : > { %p1511_p6 = pnand %p1509_p7, %p1497_p4  ;;  %s1515_s7 = scalar_lea.vmem %s1514_s4, 512 }
  0x51   : > { %p1516_p8 = scmp.lt.s32.totalorder %s330_s8, %s1514_s4  ;;  %p1517_p3 = scmp.lt.s32.totalorder %s1515_s7, %s1508_s14 }
  0x52   : > { %p1512_p1 = pneg %p1511_p6 }
  0x53   : > { %p1518_p9 = por %p1517_p3, %p1516_p8 }
  0x55   : > { %p1519_p11 = pnand %p1518_p9, %p1512_p1 }
  0x57   : > { %1522 = shalt.err (!%p1519_p11)
}
  0x58   : > { %s1663_s9 = smov 64   ;;  %s1664_s24 = smov 4  }
  0x59   : > { %1250 = dma.hbm_to_vmem [thread:$0]  (!%p1873_p5), %s328_s25, 256, %s330_s8, %s317_s21, %s1663_s9, %s1663_s9, %s1664_s24  }
  0x5a   : > { %s339_s29 = sand.u32 1, %s1655_s28   ;;  %s83_s18 = sadd.s32 1, %s1623_s20 }
  0x5b   : > { %p90_p0 = scmp.ne.s32.totalorder %s1623_s20, %s1619_s1  ;;  %p2054_p11 = scmp.eq.s32.totalorder %s1655_s28, 0 }
  0x5c   : > { %s1888_s0 = scalar_select %p1859_p2, %s1623_s20, %s83_s18  }
  0x5d   : > { %p92_p9 = por %p90_p0, %p2054_p11  ;;  %s341_s19 = sand.u32 1, %s1623_s20  }
  0x5e   : > { %s1227_s16 = sshll.u32 %s1651_s27, 10  ;;  %s1159_s14 = sshll.u32 %s341_s19, 6 }
  0x5f   : > { %s350_s7 = scalar_lea.hbm %s2015_s3, %s1227_s16  ;;  %p1899_p4 = pnand %p1256_p13, %p92_p9 }
  0x60   : > { %s343_s8 = scalar_lea.vmem [#allocation7], %s1159_s14  ;;  %s340_s5 = scalar_lea.sflag [#allocation8], %s339_s29 }
  0x61   : > { %s351_s25 = sshll.u32 %s343_s8, 4  ;;  %p1525_p2 = pneg %p1899_p4  ;;  %s352_s25 = int_to_ptr.vmem [resolvable:$true] %s351_s25 }
  0x62   : > { %s1536_s17 = scalar_lea.vmem %s352_s25, 1024  ;;  %s1665_s21 = smov [#allocation7]  }
  0x63   : > { %p1537_p5 = scmp.ne.s32.totalorder %s352_s25, %s1536_s17  ;;  %s1541_s9 = sshll.u32 %s1665_s21, 4  ;;  %s1542_s9 = int_to_ptr.vmem [resolvable:$false] %s1541_s9 }
  0x64   : > { %s1543_s24 = scalar_lea.vmem %s1542_s9, 2048  ;;  %p1544_p1 = scmp.lt.s32.totalorder %s352_s25, %s1542_s9 }
  0x65   : > { %p1539_p7 = pnand %p1537_p5, %p1525_p2  ;;  %p1545_p13 = scmp.lt.s32.totalorder %s1543_s24, %s1536_s17 }
  0x67   : > { %p1540_p6 = pneg %p1539_p7  ;;  %p1546_p8 = por %p1545_p13, %p1544_p1 }
  0x69   : > { %p1547_p3 = pnand %p1546_p8, %p1540_p6 }
  0x6b   : > { %1550 = shalt.err (!%p1547_p3)
}
  0x6c   : > { %s1666_s18 = smov 256   ;;  %s1667_s19 = smov 16  }
  0x6d   : > { %1253 = dma.hbm_to_vmem [thread:$0]  (!%p1899_p4), %s350_s7, 1024, %s352_s25, %s340_s5, %s1666_s18, %s1666_s18, %s1667_s19  }
  0x6e   : > { %372 = sbr.rel (%p1804_p12) target bundleno = 724 (0x2d4), region = 52  ;;  %s374_s29 = sand.u32 (!%p1804_p12), 1, %s1631_s22  }
  0x6f   : > { %s1910_s16 = sshll.u32 (!%p1804_p12), %s374_s29, 4  ;;  %s375_s14 = scalar_lea.sflag (!%p1804_p12), [#allocation6], %s374_s29 }
  0x70   : > { %s378_s10 = scalar_lea.vmem (!%p1804_p12), [#allocation5], %s1910_s16 }
  0x73   : > { %1598 = dma.done.wait (%p1794_p10), %s375_s14, 256  }
  0x74   : > { %1600 = vsyncadd (%p1794_p10), %s375_s14, 4294967040  ;;  %s2056_s4 = sadd.s32 4294967295, %s1655_s28   ;;  %s385_s13 = sand.u32 1, %s1619_s1  }
  0x75   : > { %s383_s2 = sand.u32 1, %s2056_s4   ;;  %s1165_s7 = sshll.u32 %s385_s13, 6 }
  0x76   : > { %s384_s8 = scalar_lea.sflag [#allocation8], %s383_s2  ;;  %s1920_s25 = scalar_lea.vmem [#allocation7], %s1165_s7 }
  0x77   : > { %p2057_p12 = scmp.ne.s32.totalorder %s2044_s12, 0 }
  0x79   : > { %1602 = dma.done.wait (%p2057_p12), %s384_s8, 1024  }
  0x7a   : > { %1604 = vsyncadd (%p2057_p12), %s384_s8, 4294966272  ;;  %p2058_p0 = scmp.ne.s32.totalorder %s2042_s30, 0 }
  0x7c   : > { %1606 = dma.done.wait (%p2058_p0), [#allocation8], 2048  }
  0x7d   : > { %1608 = vsyncadd (%p2058_p0), [#allocation8], 4294965248 }
  0x7e   : > { %1610 = dma.done.wait (%p2058_p0), [#allocation11], 4096  }
  0x7f   : > { %1612 = vsyncadd (%p2058_p0), [#allocation11], 4294963200  ;;  %v1668_v0 = vmov 0   ;;  %v1357_v1 = vld [vmem:[#allocation9 + $0x74] ss:$8 sps:$4 sm:$0xff]   ;;  %v483_v51 = vlaneseq  ;;  %s2059_s17 = sld [smem:[#allocation25_spill]] }
  0x80   : > { %617 = vmatprep.mubr.bf16.mxu0 %v1668_v0  ;;  %v1359_v2 = vld [vmem:[#allocation9 + $0x70] ss:$8 sps:$4 sm:$0xff]   ;;  %585 = vmatprep.subr.bf16.mxu0 %v1357_v1  ;;  %v1360_v3 = vld [vmem:[#allocation9 + $0x64] ss:$8 sps:$4 sm:$0xff]   ;;  %v1362_v4 = vld [vmem:[#allocation9 + $0x60] ss:$8 sps:$4 sm:$0xff]  }
  0x81   : > { %586 = vmatpush1.bf16.msra.mxu0 %v1359_v2  ;;  %v1363_v5 = vld [vmem:[#allocation9 + $0x54] ss:$8 sps:$4 sm:$0xff]   ;;  %v1365_v6 = vld [vmem:[#allocation9 + $0x50] ss:$8 sps:$4 sm:$0xff]   ;;  %v1366_v7 = vld [vmem:[#allocation9 + $0x44] ss:$8 sps:$4 sm:$0xff]  }
  0x82   : > { %587 = vmatprep.subr.bf16.mxu0 %v1360_v3  ;;  %v1368_v8 = vld [vmem:[#allocation9 + $0x40] ss:$8 sps:$4 sm:$0xff]   ;;  %v1369_v9 = vld [vmem:[#allocation9 + $0x34] ss:$8 sps:$4 sm:$0xff]   ;;  %v1385_v11 = vld [vmem:[#allocation10 + $0x70] ss:$8 sps:$4 sm:$0xff]  }
  0x83   : > { %v1383_v10 = vld [vmem:[#allocation10 + $0x74] ss:$8 sps:$4 sm:$0xff]   ;;  %v1386_v12 = vld [vmem:[#allocation10 + $0x64] ss:$8 sps:$4 sm:$0xff]   ;;  %v1371_v13 = vld [vmem:[#allocation9 + $0x30] ss:$8 sps:$4 sm:$0xff]  }
  0x84   : > { %854 = vmatprep.subr.bf16.mxu1 %v1383_v10  ;;  %v1372_v14 = vld [vmem:[#allocation9 + $0x24] ss:$8 sps:$4 sm:$0xff]   ;;  %v1388_v15 = vld [vmem:[#allocation10 + $0x60] ss:$8 sps:$4 sm:$0xff]   ;;  %v1389_v16 = vld [vmem:[#allocation10 + $0x54] ss:$8 sps:$4 sm:$0xff]  }
  0x85   : > { %588 = vmatpush1.bf16.msra.mxu0 %v1362_v4  ;;  %855 = vmatpush1.bf16.msra.mxu1 %v1385_v11  ;;  %v1374_v17 = vld [vmem:[#allocation9 + $0x20] ss:$8 sps:$4 sm:$0xff]   ;;  %v1375_v18 = vld [vmem:[#allocation9 + $0x14] ss:$8 sps:$4 sm:$0xff]   ;;  %v1391_v19 = vld [vmem:[#allocation10 + $0x50] ss:$8 sps:$4 sm:$0xff]  }
  0x86   : > { %589 = vmatprep.subr.bf16.mxu0 %v1363_v5  ;;  %856 = vmatprep.subr.bf16.mxu1 %v1386_v12  ;;  %v1392_v20 = vld [vmem:[#allocation10 + $0x44] ss:$8 sps:$4 sm:$0xff]   ;;  %v1377_v21 = vld [vmem:[#allocation9 + $0x10] ss:$8 sps:$4 sm:$0xff]   ;;  %v1394_v23 = vld [vmem:[#allocation10 + $0x40] ss:$8 sps:$4 sm:$0xff]  }
  0x87   : > { %v1378_v22 = vld [vmem:[#allocation9 + $0x4] ss:$8 sps:$4 sm:$0xff]   ;;  %v1395_v24 = vld [vmem:[#allocation10 + $0x34] ss:$8 sps:$4 sm:$0xff]   ;;  %v1380_v25 = vld [vmem:[#allocation9] ss:$8 sps:$4 sm:$0xff]  }
  0x88   : > { %v1397_v26 = vld [vmem:[#allocation10 + $0x30] ss:$8 sps:$4 sm:$0xff]   ;;  %v1398_v27 = vld [vmem:[#allocation10 + $0x24] ss:$8 sps:$4 sm:$0xff]   ;;  %v1400_v29 = vld [vmem:[#allocation10 + $0x20] ss:$8 sps:$4 sm:$0xff]  }
  0x89   : > { %590 = vmatpush1.bf16.msra.mxu0 %v1365_v6  ;;  %857 = vmatpush1.bf16.msra.mxu1 %v1388_v15  ;;  %v1381_v28 = vld [vmem:[%s378_s10] sm:$0xff]   ;;  %v1382_v33 = vld [vmem:[%s378_s10 + $0x8] sm:$0xff]   ;;  %v484_v52 = vshrl.u32 %v483_v51, 7  ;;  %s2060_s24 = sld [smem:[#allocation26_spill]]  ;;  %vm999_vm0 = vcmask 7168  }
  0x8a   : > { %591 = vmatprep.subr.bf16.mxu0 %v1366_v7  ;;  %858 = vmatprep.subr.bf16.mxu1 %v1389_v16  ;;  %v1401_v30 = vld [vmem:[#allocation10 + $0x14] ss:$8 sps:$4 sm:$0xff]   ;;  %v1403_v31 = vld [vmem:[#allocation10 + $0x10] ss:$8 sps:$4 sm:$0xff]   ;;  %v1404_v32 = vld [vmem:[#allocation10 + $0x4] ss:$8 sps:$4 sm:$0xff]  }
  0x8b   : > { %v1406_v34 = vld [vmem:[#allocation10] ss:$8 sps:$4 sm:$0xff]   ;;  %v1407_v35 = vld [vmem:[#allocation10 + $0xf4] ss:$8 sps:$4 sm:$0xff]   ;;  %v1409_v36 = vld [vmem:[#allocation10 + $0xf0] ss:$8 sps:$4 sm:$0xff]  }
  0x8c   : > { %v1410_v37 = vld [vmem:[#allocation10 + $0xe4] ss:$8 sps:$4 sm:$0xff]   ;;  %v1412_v38 = vld [vmem:[#allocation10 + $0xe0] ss:$8 sps:$4 sm:$0xff]   ;;  %v1413_v39 = vld [vmem:[#allocation10 + $0xd4] ss:$8 sps:$4 sm:$0xff]  }
  0x8d   : > { %592 = vmatpush1.bf16.msra.mxu0 %v1368_v8  ;;  %859 = vmatpush1.bf16.msra.mxu1 %v1391_v19  ;;  %v1415_v40 = vld [vmem:[#allocation10 + $0xd0] ss:$8 sps:$4 sm:$0xff]   ;;  %v1416_v41 = vld [vmem:[#allocation10 + $0xc4] ss:$8 sps:$4 sm:$0xff]   ;;  %v1418_v42 = vld [vmem:[#allocation10 + $0xc0] ss:$8 sps:$4 sm:$0xff]  }
  0x8e   : > { %593 = vmatprep.subr.bf16.mxu0 %v1369_v9  ;;  %860 = vmatprep.subr.bf16.mxu1 %v1392_v20  ;;  %v1419_v43 = vld [vmem:[#allocation10 + $0xb4] ss:$8 sps:$4 sm:$0xff]   ;;  %v1421_v44 = vld [vmem:[#allocation10 + $0xb0] ss:$8 sps:$4 sm:$0xff]   ;;  %v1422_v45 = vld [vmem:[#allocation10 + $0xa4] ss:$8 sps:$4 sm:$0xff]  }
  0x8f   : > { %v1424_v46 = vld [vmem:[#allocation10 + $0xa0] ss:$8 sps:$4 sm:$0xff]   ;;  %v1425_v47 = vld [vmem:[#allocation10 + $0x94] ss:$8 sps:$4 sm:$0xff]   ;;  %v1427_v48 = vld [vmem:[#allocation10 + $0x90] ss:$8 sps:$4 sm:$0xff]  }
  0x90   : > { %v1428_v49 = vld [vmem:[#allocation10 + $0x84] ss:$8 sps:$4 sm:$0xff]   ;;  %v1430_v50 = vld [vmem:[#allocation10 + $0x80] ss:$8 sps:$4 sm:$0xff]   ;;  %v1938_v53 = vsub.s32 0, %v484_v52  ;;  %v1943_v55 = vsub.s32 1, %v484_v52 }
  0x91   : > { %594 = vmatpush1.bf16.msra.mxu0 %v1371_v13  ;;  %861 = vmatpush1.bf16.msra.mxu1 %v1394_v23  ;;  %v481_v54 = vld [vmem:[%s2018_s6] sm:$0x3]  ;;  %v917_v6 = vld [vmem:[%s1920_s25 + $0x10] sm:$0xff]  ;;  %v918_v9 = vld [vmem:[%s1920_s25 + $0x18] sm:$0xff]  ;;  %s2061_s18 = sld [smem:[#allocation18_spill]] }
  0x92   : > { %595 = vmatprep.subr.bf16.mxu0 %v1372_v14  ;;  %862 = vmatprep.subr.bf16.mxu1 %v1395_v24  ;;  %v486_v56 = vrot.slane %v481_v54, %v1938_v53  ;;  %v490_v57 = vrot.slane %v481_v54, %v1943_v55  ;;  %v915_v3 = vld [vmem:[%s1920_s25] sm:$0xff]  ;;  %v920_v24 = vld [vmem:[%s1920_s25 + $0x28] sm:$0xff]  ;;  %s2062_s19 = sld [smem:[#allocation17_spill]] }
  0x93   : > { %v919_v23 = vld [vmem:[%s1920_s25 + $0x20] sm:$0xff]  ;;  %s2063_s8 = sld [smem:[#allocation22_spill]] }
  0x94   : > { %s993_s30 = sld [smem:[#allocation4]] }
  0x95   : > { %596 = vmatpush1.bf16.msra.mxu0 %v1374_v17  ;;  %863 = vmatpush1.bf16.msra.mxu1 %v1397_v26 }
  0x96   : > { %597 = vmatprep.subr.bf16.mxu0 %v1375_v18  ;;  %864 = vmatprep.subr.bf16.mxu1 %v1398_v27 }
  0x97   : > { %s1168_s29 = sshll.u32 %s2061_s18, 2 }
  0x98   : > { %p445_p10 = scmp.lt.s32.totalorder %s1168_s29, 7  ;;  %s1170_s16 = sshll.u32 %s2062_s19, 1 }
  0x99   : > { %598 = vmatpush1.bf16.msra.mxu0 %v1377_v21  ;;  %865 = vmatpush1.bf16.msra.mxu1 %v1400_v29  ;;  %s451_s14 = sadd.s32 %s2061_s18, %s1170_s16  ;;  %s983_s2 = sld [smem:[#allocation3 + %s2062_s19]] }
  0x9a   : > { %599 = vmatprep.subr.bf16.mxu0 %v1378_v22  ;;  %866 = vmatprep.subr.bf16.mxu1 %v1401_v30  ;;  %s2084_s29 = smov (!%p445_p10, %s1168_s29), 7  ;;  %s1171_s4 = sshll.u32 %s451_s14, 2 }
  0x9b   : > { %s1169_s10 = sshll.u32 %s2084_s29, 3  ;;  %p453_p11 = scmp.lt.s32.totalorder %s1171_s4, 31 }
  0x9d   : > { %600 = vmatpush1.bf16.msra.mxu0 %v1380_v25  ;;  %867 = vmatpush1.bf16.msra.mxu1 %v1403_v31  ;;  %s2086_s4 = smov (!%p453_p11, %s1171_s4), 31 }
  0x9e   : > { %868 = vmatprep.subr.bf16.mxu1 %v1404_v32  ;;  %s1172_s11 = sshll.u32 %s2086_s4, 3 }
  0xa0   : > { %618 = vmatmul.mubr.bf16.vlgmr.msra.gmra.mxu0 %v1381_v28 }
  0xa1   : > { %627 = vmatprep.mubr.bf16.mxu0 %v1668_v0  ;;  %869 = vmatpush1.bf16.msra.mxu1 %v1406_v34  ;;  %v916_v0 = vld [vmem:[%s1920_s25 + $0x8] sm:$0xff]  ;;  %v922_v34 = vld [vmem:[%s1920_s25 + $0x38] sm:$0xff] }
  0xa2   : > { %870 = vmatprep.subr.bf16.mxu1 %v1407_v35 }
  0xa5   : > { %871 = vmatpush2.bf16.msra.mxu1 %v1409_v36 }
  0xa6   : > { %872 = vmatprep.subr.bf16.mxu1 %v1410_v37 }
  0xa8   : > { %628 = vmatmul.mubr.bf16.gmra.mxu0 %v1382_v33  ;;  %v921_v33 = vld [vmem:[%s1920_s25 + $0x30] sm:$0xff]  ;;  %s448_s25 = scalar_lea.vmem %s2063_s8, %s1169_s10 }
  0xa9   : > { %873 = vmatpush2.bf16.msra.mxu1 %v1412_v38 }
  0xaa   : > { %874 = vmatprep.subr.bf16.mxu1 %v1413_v39 }
  0xad   : > { %875 = vmatpush2.bf16.msra.mxu1 %v1415_v40 }
  0xae   : > { %876 = vmatprep.subr.bf16.mxu1 %v1416_v41 }
  0xb1   : > { %877 = vmatpush2.bf16.msra.mxu1 %v1418_v42  ;;  %v682_v42 = vld [vmem:[%s2059_s17] sm:$0x3]  ;;  %s2064_s17 = sld [smem:[#allocation27_spill]] }
  0xb2   : > { %878 = vmatprep.subr.bf16.mxu1 %v1419_v43  ;;  %v687_v43 = vrot.slane %v682_v42, %v1938_v53 }
  0xb5   : > { %879 = vmatpush2.bf16.msra.mxu1 %v1421_v44  ;;  %v691_v44 = vrot.slane %v682_v42, %v1943_v55 }
  0xb6   : > { %880 = vmatprep.subr.bf16.mxu1 %v1422_v45 }
  0xb7   : > { %s456_s21 = scalar_lea.vmem %s2064_s17, %s1172_s11 }
  0xb9   : > { %881 = vmatpush2.bf16.msra.mxu1 %v1424_v46  ;;  %v951_v46 = vld [vmem:[%s2060_s24] sm:$0x3] }
  0xba   : > { %882 = vmatprep.subr.bf16.mxu1 %v1425_v47  ;;  %v960_v52 = vrot.slane %v951_v46, %v1943_v55 }
  0xbd   : > { %883 = vmatpush2.bf16.msra.mxu1 %v1427_v48 }
  0xbe   : > { %884 = vmatprep.subr.bf16.mxu1 %v1428_v49 }
  0xc1   : > { %885 = vmatpush2.bf16.msra.mxu1 %v1430_v50  ;;  %v956_v50 = vrot.slane %v951_v46, %v1938_v53 }
 0x160   : > { %v619_v58 = vpop.f32.mrf.mxu0 }
 0x161   : > { %v620_v59 = vadd.f32 %v619_v58, %v486_v56 }
 0x162   : > { %v621_v60 = vpop.f32.mrf.mxu0 }
 0x163   : > { %v622_v61 = vadd.f32 %v621_v60, %v490_v57  ;;  %v638_v62 = vmax.f32 %v620_v59, 0.0 }
 0x164   : > { %v623_v63 = vpop.f32.mrf.mxu0 }
 0x165   : > { %v639_v1 = vmax.f32 %v622_v61, 0.0  ;;  %v624_v2 = vadd.f32 %v623_v63, %v486_v56  ;;  %v923_v11 = vmul.f32 %v915_v3, %v638_v62 }
 0x166   : > { %v625_v4 = vpop.f32.mrf.mxu0 }
 0x167   : > { %v640_v5 = vmax.f32 %v624_v2, 0.0  ;;  %v626_v7 = vadd.f32 %v625_v4, %v490_v57  ;;  %v924_v8 = vmul.f32 %v916_v0, %v639_v1 }
 0x168   : > { %v629_v10 = vpop.f32.mrf.mxu0 }
 0x169   : > { %v641_v12 = vmax.f32 %v626_v7, 0.0  ;;  %v630_v13 = vadd.f32 %v629_v10, %v486_v56  ;;  %v925_v14 = vmul.f32 %v917_v6, %v640_v5  ;;  %v931_v16 = vadd.f32 %v924_v8, %v923_v11 }
 0x16a   : > { %v631_v15 = vpop.f32.mrf.mxu0  ;;  %v646_v21 = vpack.c.bf16 %v640_v5, %v638_v62 }
 0x16b   : > { %v926_v17 = vmul.f32 %v918_v9, %v641_v12  ;;  %v642_v18 = vmax.f32 %v630_v13, 0.0  ;;  %v632_v19 = vadd.f32 %v631_v15, %v490_v57  ;;  %v647_v20 = vpack.c.bf16 %v641_v12, %v639_v1  ;;  %932 = vadd.xlane.f32.xlu0 %v931_v16 }
 0x16c   : > { %v633_v22 = vpop.f32.mrf.mxu0 }
 0x16d   : > { %v643_v25 = vmax.f32 %v632_v19, 0.0  ;;  %v634_v26 = vadd.f32 %v633_v22, %v486_v56  ;;  %886 = vmatprep.mubr.bf16.mxu1 %v647_v20  ;;  %v934_v27 = vadd.f32 %v926_v17, %v925_v14  ;;  %v927_v31 = vmul.f32 %v919_v23, %v642_v18 }
 0x16e   : > { %v635_v28 = vpop.f32.mrf.mxu0  ;;  %887 = vmatmul.mubr.bf16.vlgmr.msra.gmra.mxu1 %v646_v21  ;;  %v943_v21 = vld [vmem:[%s448_s25] sm:$0xff] }
 0x16f   : > { %v644_v29 = vmax.f32 %v634_v26, 0.0  ;;  %v636_v30 = vadd.f32 %v635_v28, %v490_v57  ;;  %v928_v32 = vmul.f32 %v920_v24, %v643_v25  ;;  %935 = vadd.xlane.f32.xlu0 %v934_v27  ;;  %v944_v24 = vld [vmem:[%s448_s25 + $0x8] sm:$0xff]  ;;  %v984_v26 = vstv %s983_s2 }
 0x171   : > { %v645_v35 = vmax.f32 %v636_v30, 0.0  ;;  %v937_v36 = vadd.f32 %v928_v32, %v927_v31  ;;  %v929_v37 = vmul.f32 %v921_v33, %v644_v29  ;;  %v648_v40 = vpack.c.bf16 %v644_v29, %v642_v18  ;;  %v945_v29 = vld [vmem:[%s448_s25 + $0x10] sm:$0xff] }
 0x172   : > { %v994_v31 = vstv %s993_s30 }
 0x173   : > { %v649_v38 = vpack.c.bf16 %v645_v35, %v643_v25  ;;  %v930_v39 = vmul.f32 %v922_v34, %v645_v35  ;;  %938 = vadd.xlane.f32.xlu1 %v937_v36 }
 0x175   : > { %896 = vmatprep.mubr.bf16.mxu1 %v649_v38  ;;  %v940_v41 = vadd.f32 %v930_v39, %v929_v37  ;;  %v946_v37 = vld [vmem:[%s448_s25 + $0x18] sm:$0xff] }
 0x176   : > { %897 = vmatmul.mubr.bf16.gmra.mxu1 %v648_v40 }
 0x177   : > { %941 = vadd.xlane.f32.xlu1 %v940_v41 }
 0x1f4   : > { %v933_v20 = vpop.xlane.xlu0 %932 }
 0x1f5   : > { %v947_v23 = vadd.f32 %v943_v21, %v933_v20 }
 0x1f7   : > { %v985_v28 = vmul.f32 %v984_v26, %v947_v23 }
 0x1f8   : > { %v936_v25 = vpop.xlane.xlu0 %935 }
 0x1f9   : > { %v948_v27 = vadd.f32 %v944_v24, %v936_v25 }
 0x1fb   : > { %v986_v36 = vmul.f32 %v984_v26, %v948_v27 }
 0x1fc   : > { %v939_v22 = vpop.xlane.xlu1 %938 }
 0x1fd   : > { %v949_v34 = vadd.f32 %v945_v29, %v939_v22 }
 0x1ff   : > { %v987_v42 = vmul.f32 %v984_v26, %v949_v34 }
 0x200   : > { %v942_v30 = vpop.xlane.xlu1 %941 }
 0x201   : > { %v950_v40 = vadd.f32 %v946_v37, %v942_v30 }
 0x203   : > { %v988_v46 = vmul.f32 %v984_v26, %v950_v40 }
 0x22e   : > { %v888_v45 = vpop.f32.mrf.mxu1 }
 0x22f   : > { %v889_v47 = vadd.f32 %v888_v45, %v687_v43 }
 0x230   : > { %v890_v48 = vpop.f32.mrf.mxu1 }
 0x231   : > { %v907_v49 = vmax.f32 %v889_v47, 0.0  ;;  %v891_v51 = vadd.f32 %v890_v48, %v691_v44 }
 0x232   : > { %v892_v54 = vpop.f32.mrf.mxu1 }
 0x233   : > { %v908_v56 = vmax.f32 %v891_v51, 0.0  ;;  %v893_v57 = vadd.f32 %v892_v54, %v687_v43  ;;  %v963_v59 = vmul.f32 %v956_v50, %v907_v49 }
 0x234   : > { %v894_v58 = vpop.f32.mrf.mxu1 }
 0x235   : > { %v964_v60 = vmul.f32 %v960_v52, %v908_v56  ;;  %v909_v61 = vmax.f32 %v893_v57, 0.0  ;;  %v895_v62 = vadd.f32 %v894_v58, %v691_v44 }
 0x236   : > { %v898_v63 = vpop.f32.mrf.mxu1 }
 0x237   : > { %v910_v0 = vmax.f32 %v895_v62, 0.0  ;;  %v899_v1 = vadd.f32 %v898_v63, %v687_v43  ;;  %v971_v2 = vadd.f32 %v964_v60, %v963_v59  ;;  %v965_v4 = vmul.f32 %v956_v50, %v909_v61 }
 0x238   : > { %v900_v3 = vpop.f32.mrf.mxu1 }
 0x239   : > { %v966_v5 = vmul.f32 %v960_v52, %v910_v0  ;;  %v911_v6 = vmax.f32 %v899_v1, 0.0  ;;  %v901_v53 = vadd.f32 %v900_v3, %v691_v44  ;;  %972 = vadd.xlane.f32.xlu0 %v971_v2 }
 0x23a   : > { %v902_v7 = vpop.f32.mrf.mxu1 }
 0x23b   : > { %v912_v55 = vmax.f32 %v901_v53, 0.0  ;;  %v903_v8 = vadd.f32 %v902_v7, %v687_v43  ;;  %v974_v9 = vadd.f32 %v966_v5, %v965_v4  ;;  %v967_v11 = vmul.f32 %v956_v50, %v911_v6 }
 0x23c   : > { %v904_v10 = vpop.f32.mrf.mxu1 }
 0x23d   : > { %v968_v12 = vmul.f32 %v960_v52, %v912_v55  ;;  %v913_v13 = vmax.f32 %v903_v8, 0.0  ;;  %v905_v14 = vadd.f32 %v904_v10, %v691_v44  ;;  %975 = vadd.xlane.f32.xlu1 %v974_v9 }
 0x23f   : > { %v914_v15 = vmax.f32 %v905_v14, 0.0  ;;  %v977_v16 = vadd.f32 %v968_v12, %v967_v11  ;;  %v969_v17 = vmul.f32 %v956_v50, %v913_v13 }
 0x241   : > { %v970_v18 = vmul.f32 %v960_v52, %v914_v15  ;;  %978 = vadd.xlane.f32.xlu0 %v977_v16 }
 0x243   : > { %v980_v19 = vadd.f32 %v970_v18, %v969_v17 }
 0x245   : > { %981 = vadd.xlane.f32.xlu1 %v980_v19 }
 0x2c2   : > { %v973_v32 = vpop.xlane.xlu0 %972 }
 0x2c3   : > { %v989_v33 = vadd.f32 %v985_v28, %v973_v32 }
 0x2c5   : > { %v995_v35 = vadd.f32 %v994_v31, %v989_v33 }
 0x2c6   : > { %v976_v38 = vpop.xlane.xlu1 %975 }
 0x2c7   : > { %1000 = vst.msk [vmem:[%s456_s21] sm:$0xff] %vm999_vm0, %v995_v35  ;;  %v990_v39 = vadd.f32 %v986_v36, %v976_v38 }
 0x2c9   : > { %v996_v41 = vadd.f32 %v994_v31, %v990_v39 }
 0x2ca   : > { %v979_v43 = vpop.xlane.xlu0 %978 }
 0x2cb   : > { %1001 = vst.msk [vmem:[%s456_s21 + $0x8] sm:$0xff] %vm999_vm0, %v996_v41  ;;  %v991_v44 = vadd.f32 %v987_v42, %v979_v43 }
 0x2cd   : > { %v997_v45 = vadd.f32 %v994_v31, %v991_v44 }
 0x2ce   : > { %v982_v47 = vpop.xlane.xlu1 %981 }
 0x2cf   : > { %1002 = vst.msk [vmem:[%s456_s21 + $0x10] sm:$0xff] %vm999_vm0, %v997_v45  ;;  %v992_v48 = vadd.f32 %v988_v46, %v982_v47 }
 0x2d1   : > { %v998_v49 = vadd.f32 %v994_v31, %v992_v48 }
 0x2d3   : > { %1003 = vst.msk [vmem:[%s456_s21 + $0x18] sm:$0xff] %vm999_vm0, %v998_v49 }
 0x2d4 PF: > { %s34_s28 = sadd.s32 1, %s1655_s28   ;;  %s2065_s9 = smov %s1888_s0 }
 0x2d5   : > { %p31_p9 = scmp.ge.s32.totalorder %s34_s28, 10   ;;  %s2066_s24 = sld [smem:[#allocation19_spill]] }
 0x2d6   : > { %s2067_s18 = sld [smem:[#allocation20_spill]]  ;;  %s2068_s0 = smov %s1619_s1 }
 0x2d7   : > { %s2069_s1 = smov %s1623_s20  ;;  %s2070_s20 = smov %s2065_s9 }
 0x2d8   : > { %s2071_s21 = smov %s1631_s22  ;;  %s2072_s22 = smov %s1635_s23 }
 0x2d9   : > { %s2073_s23 = smov %s1864_s26  ;;  %s2074_s25 = smov %s1651_s27 }
 0x2da   : > { %s2076_s27 = smov %s2082_s15  ;;  %33 = sbr.rel (!%p31_p9) target bundleno = 27 (0x1b), region = 116 }
 0x2dc   : > { %s2075_s26 = smov %s2067_s18 }
 0x2df   :  { %1032 = vsyncpa [#allocation6], 1 }
 0x2e0   :  { %1034 = vsyncpa [#allocation6 + $0x1], 1 }
 0x2e1   :  { %1035 = vsyncpa [#allocation8], 1 }
 0x2e2   :  { %1037 = vsyncpa [#allocation8 + $0x1], 1 }
 0x2e3   :  { %1038 = vsyncpa [#allocation11], 1 }

// kernel: tpu_custom_call.1
= control target key start
LH: loop header
LB: loop body
LE: loop exit
PB: predicated region body
PF: predicated region fallthrough
CT: control target
= control target key end

     0   :  { %s2012_s0 = inlined_call_operand.vmem [shape: f32[4], index: 0, kind: input, shape index: {}]   ;;  %s2013_s1 = inlined_call_operand.<no memory space> [shape: f32[1], index: 1, kind: input, shape index: {}]   ;;  %s2014_s2 = inlined_call_operand.hbm [shape: bf16[256,128], index: 2, kind: input, shape index: {}]   ;;  %s2015_s3 = inlined_call_operand.hbm [shape: f32[64,256], index: 3, kind: input, shape index: {}]   ;;  %s2016_s4 = inlined_call_operand.vmem [shape: f32[64,1], index: 4, kind: input, shape index: {}]   ;;  %s2017_s5 = inlined_call_operand.hbm [shape: bf16[128,256], index: 5, kind: input, shape index: {}]   ;;  %s2018_s6 = inlined_call_operand.vmem [shape: f32[1,256], index: 6, kind: input, shape index: {}]   ;;  %s2019_s7 = inlined_call_operand.hbm [shape: bf16[256,256], index: 7, kind: input, shape index: {}]   ;;  %s2020_s8 = inlined_call_operand.vmem [shape: f32[1,256], index: 8, kind: input, shape index: {}]   ;;  %s2021_s9 = inlined_call_operand.vmem [shape: f32[1,256], index: 9, kind: input, shape index: {}]   ;;  %s2022_s10 = inlined_call_operand.vmem [shape: f32[256,1], index: 10, kind: output, shape index: {}]  }
   0x1   :  { %2032 = sst [smem:[#allocation21_spill]] %s2014_s2  ;;  %s15_s15 = sshll.u32 %s2012_s0, 4  ;;  %s16_s15 = int_to_ptr.vmem [resolvable:$true] %s15_s15 }
   0x2   :  { %2033 = sst [smem:[#allocation22_spill]] %s2016_s4  ;;  %s1431_s18 = scalar_lea.vmem %s16_s15, 16 }
   0x3   :  { %2034 = sst [smem:[#allocation23_spill]] %s2017_s5  ;;  %p1432_p0 = scmp.ne.s32.totalorder %s16_s15, %s1431_s18 }
   0x4   :  { %2035 = sst [smem:[#allocation24_spill]] %s2019_s7  ;;  %p1436_p1 = scmp.lt.s32.totalorder %s16_s15, %s16_s15 }
   0x5   :  { %2036 = sst [smem:[#allocation25_spill]] %s2020_s8  ;;  %p1437_p2 = scmp.lt.s32.totalorder %s1431_s18, %s1431_s18 }
   0x6   :  { %2037 = sst [smem:[#allocation26_spill]] %s2021_s9 }
   0x7   :  { %2038 = sst [smem:[#allocation27_spill]] %s2022_s10  ;;  %p1438_p3 = por %p1437_p2, %p1436_p1 }
   0x8   :  { %19 = sst [smem:[#allocation4]] %s2013_s1 }
   0x9   :  { %p1439_p4 = pnand %p1438_p3, %p1432_p0 }
   0xb   :  { %1442 = shalt.err (!%p1439_p4)  }
   0xc   :  { %s1657_s19 = smov [#allocation3]  }
   0xd   :  { %18 = dma.vmem_to_smem %s16_s15, 16, %s1657_s19, [#allocation2] }
   0xe   :  { %1595 = dma.done.wait [#allocation2], 16 }
   0xf   :  { %1596 = vsyncadd [#allocation2], 4294967280 }
  0x10   :  { %21 = sfence }
  0x11   :  { %22 = vsyncpa [#allocation6], 0 }
  0x12   :  { %24 = vsyncpa [#allocation6 + $0x1], 0 }
  0x13   :  { %25 = vsyncpa [#allocation8], 0 }
  0x14   :  { %27 = vsyncpa [#allocation8 + $0x1], 0 }
  0x15   :  { %28 = vsyncpa [#allocation11], 0  ;;  %s1730_s0 = smov 0   ;;  %s1732_s1 = smov 0  }
  0x16   :  { %s1734_s20 = smov 0   ;;  %s1736_s21 = smov 0  }
  0x17   :  { %s1738_s22 = smov 0   ;;  %s1740_s23 = smov 0  }
  0x18   :  { %s1742_s24 = smov 0   ;;  %s1744_s25 = smov 0  }
  0x19   :  { %s1746_s26 = smov 0   ;;  %s1748_s27 = smov 0  }
  0x1a   :  { %s1750_s28 = smov 0  }
  0x1b LB: > { %2039 = sst [smem:[#allocation17_spill]] %s1639_s24  ;;  %s2023_s29 = sadd.s32 4294967295, %s1655_s28   ;;  %s1655_s28 = sphi %s1750_s28, %s34_s28   ;;  %s1651_s27 = sphi %s1748_s27, %s2076_s27   ;;  %s1647_s26 = sphi %s1746_s26, %s2075_s26   ;;  %s1643_s25 = sphi %s1744_s25, %s2074_s25   ;;  %s1639_s24 = sphi %s1742_s24, %s2066_s24   ;;  %s1635_s23 = sphi %s1740_s23, %s2073_s23   ;;  %s1631_s22 = sphi %s1738_s22, %s2072_s22   ;;  %s1627_s21 = sphi %s1736_s21, %s2071_s21   ;;  %s1623_s20 = sphi %s1734_s20, %s2070_s20   ;;  %s1619_s1 = sphi %s1732_s1, %s2069_s1   ;;  %s1615_s0 = sphi %s1730_s0, %s2068_s0  }
  0x1c   : > { %2040 = sst [smem:[#allocation18_spill]] %s1643_s25  ;;  %p70_p5 = scmp.ne.s32.totalorder %s1631_s22, %s1627_s21 }
  0x1d   : > { %2041 = sst [smem:[#allocation19_spill]] %s1647_s26  ;;  %p1785_p6 = scmp.eq.s32.totalorder %s2023_s29, 0 }
  0x1e   : > { %p96_p7 = scmp.ne.s32.totalorder %s1619_s1, %s1615_s0  ;;  %p1151_p8 = scmp.ge.s32.totalorder %s1655_s28, 1 }
  0x1f   : > { %s2042_s30 = scalar_select %p1785_p6, 1, 0 }
  0x20   : > { %p268_p9 = scmp.lt.s32.totalorder %s1655_s28, 9  ;;  %p1794_p10 = por %p1785_p6, %p70_p5 }
  0x21   : > { %p1800_p11 = por %p96_p7, %p1785_p6  ;;  %s1658_s14 = smov [#allocation9]  }
  0x22   : > { %p1804_p12 = pnand %p1151_p8, %p268_p9  ;;  %s280_s15 = sshll.u32 %s1658_s14, 4  ;;  %s281_s15 = int_to_ptr.vmem [resolvable:$true] %s280_s15 }
  0x23   : > { %s2044_s12 = scalar_select %p1800_p11, 1, 0 }
  0x24   : > { %p1240_p13 = pneg %p1804_p12  ;;  %s1659_s17 = smov [#allocation10]  }
  0x25   : > { %s296_s18 = sshll.u32 %s1659_s17, 4  ;;  %s1454_s19 = scalar_lea.vmem %s281_s15, 2048  ;;  %s297_s18 = int_to_ptr.vmem [resolvable:$true] %s296_s18 }
  0x26   : > { %p1812_p0 = pnand %p1240_p13, %p1785_p6  ;;  %p1455_p2 = scmp.ne.s32.totalorder %s281_s15, %s1454_s19 }
  0x27   : > { %p1462_p5 = scmp.lt.s32.totalorder %s281_s15, %s281_s15  ;;  %p1463_p7 = scmp.lt.s32.totalorder %s1454_s19, %s1454_s19 }
  0x28   : > { %p1445_p1 = pneg %p1812_p0 }
  0x29   : > { %p1464_p8 = por %p1463_p7, %p1462_p5 }
  0x2a   : > { %p1457_p3 = pnand %p1455_p2, %p1445_p1 }
  0x2c   : > { %p1458_p4 = pneg %p1457_p3 }
  0x2e   : > { %p1465_p9 = pnand %p1464_p8, %p1458_p4 }
  0x30   : > { %1468 = shalt.err (!%p1465_p9)
}
  0x31   : > { %s1660_s0 = smov 128   ;;  %s1661_s21 = smov 8  }
  0x32   : > { %s2047_s5 = sld [smem:[#allocation23_spill]]  ;;  %s1480_s29 = scalar_lea.vmem %s297_s18, 4096 }
  0x33   : > { %p1481_p13 = scmp.ne.s32.totalorder %s297_s18, %s1480_s29  ;;  %p1488_p6 = scmp.lt.s32.totalorder %s297_s18, %s297_s18 }
  0x34   : > { %p1489_p5 = scmp.lt.s32.totalorder %s1480_s29, %s1480_s29 }
  0x35   : > { %p1483_p2 = pnand %p1481_p13, %p1445_p1 }
  0x36   : > { %p1490_p4 = por %p1489_p5, %p1488_p6 }
  0x37   : > { %p1484_p3 = pneg %p1483_p2 }
  0x38   : > { %1243 = dma.hbm_to_vmem [thread:$0]  (!%p1812_p0), %s2047_s5, 2048, %s281_s15, [#allocation8], %s1660_s0, %s1660_s0, %s1661_s21  }
  0x39   : > { %p1491_p7 = pnand %p1490_p4, %p1484_p3 }
  0x3b   : > { %1494 = shalt.err (!%p1491_p7)
}
  0x3c   : > { %s2048_s7 = sld [smem:[#allocation24_spill]]  ;;  %s43_s29 = sadd.s32 1, %s1647_s26 }
  0x3d   : > { %s46_s15 = sadd.s32 1, %s1651_s27  ;;  %p44_p6 = scmp.ge.s32.totalorder %s43_s29, 4 }
  0x3e   : > { %s1147_s16 = sshll.u32 %s1647_s26, 1  ;;  %s57_s10 = sadd.s32 1, %s1635_s23 }
  0x3f   : > { %s51_s14 = sadd.s32 %s1651_s27, %s1147_s16  ;;  %s2078_s29 = smov (%p44_p6, %s43_s29), 0 }
  0x40   : > { %2049 = sst [smem:[#allocation20_spill]] %s2078_s29  ;;  %s2080_s15 = smov (!%p44_p6, %s46_s15), %s1651_s27 }
  0x41   : > { %s1148_s17 = sshll.u32 %s2078_s29, 1  ;;  %p64_p1 = scmp.ne.s32.totalorder %s1635_s23, %s1631_s22 }
  0x42   : > { %1246 = dma.hbm_to_vmem [thread:$0]  (!%p1812_p0), %s2048_s7, 4096, %s297_s18, [#allocation11], %s1660_s0, %s1660_s0, %s1661_s21  }
  0x43   : > { %p48_p8 = scmp.ge.s32.totalorder %s2080_s15, 2  ;;  %p2030_p9 = scmp.eq.s32.totalorder %s1655_s28, 0 }
  0x44   : > { %p1256_p13 = scmp.lt.s32.totalorder %s1655_s28, 8  ;;  %s316_s18 = sand.u32 1, %s1635_s23  }
  0x45   : > { %s2082_s15 = smov (%p48_p8, %s2080_s15), 0  ;;  %p1852_p0 = por %p2030_p9, %p64_p1 }
  0x46   : > { %s53_s21 = sadd.s32 %s1148_s17, %s2082_s15  ;;  %s80_s19 = ssub.s32 %s1651_s27, %s2082_s15 }
  0x47   : > { %s54_s16 = ssub.s32 %s51_s14, %s53_s21  ;;  %p1859_p2 = scmp.eq.s32.totalorder %s80_s19, 0 }
  0x48   : > { %p55_p3 = scmp.eq.s32.totalorder %s54_s16, 0  ;;  %s1155_s7 = sshll.u32 %s316_s18, 4 }
  0x49   : > { %s1225_s29 = sshll.u32 %s51_s14, 8  ;;  %s2052_s2 = sld [smem:[#allocation21_spill]] }
  0x4a   : > { %s1864_s26 = scalar_select %p55_p3, %s1635_s23, %s57_s10  }
  0x4b   : > { %s320_s9 = scalar_lea.vmem [#allocation5], %s1155_s7  ;;  %p1873_p5 = pnand %p1256_p13, %p1852_p0 }
  0x4c   : > { %s329_s8 = sshll.u32 %s320_s9, 4  ;;  %s317_s21 = scalar_lea.sflag [#allocation6], %s316_s18  ;;  %s330_s8 = int_to_ptr.vmem [resolvable:$true] %s329_s8 }
  0x4d   : > { %p1497_p4 = pneg %p1873_p5  ;;  %s1508_s14 = scalar_lea.vmem %s330_s8, 256 }
  0x4e   : > { %p1509_p7 = scmp.ne.s32.totalorder %s330_s8, %s1508_s14  ;;  %s1662_s10 = smov [#allocation5]  }
  0x4f   : > { %s328_s25 = scalar_lea.hbm %s2052_s2, %s1225_s29  ;;  %s1513_s4 = sshll.u32 %s1662_s10, 4  ;;  %s1514_s4 = int_to_ptr.vmem [resolvable:$false] %s1513_s4 }
  0x50   : > { %p1511_p6 = pnand %p1509_p7, %p1497_p4  ;;  %s1515_s7 = scalar_lea.vmem %s1514_s4, 512 }
  0x51   : > { %p1516_p8 = scmp.lt.s32.totalorder %s330_s8, %s1514_s4  ;;  %p1517_p3 = scmp.lt.s32.totalorder %s1515_s7, %s1508_s14 }
  0x52   : > { %p1512_p1 = pneg %p1511_p6 }
  0x53   : > { %p1518_p9 = por %p1517_p3, %p1516_p8 }
  0x55   : > { %p1519_p11 = pnand %p1518_p9, %p1512_p1 }
  0x57   : > { %1522 = shalt.err (!%p1519_p11)
}
  0x58   : > { %s1663_s9 = smov 64   ;;  %s1664_s24 = smov 4  }
  0x59   : > { %1250 = dma.hbm_to_vmem [thread:$0]  (!%p1873_p5), %s328_s25, 256, %s330_s8, %s317_s21, %s1663_s9, %s1663_s9, %s1664_s24  }
  0x5a   : > { %s339_s29 = sand.u32 1, %s1655_s28   ;;  %s83_s18 = sadd.s32 1, %s1623_s20 }
  0x5b   : > { %p90_p0 = scmp.ne.s32.totalorder %s1623_s20, %s1619_s1  ;;  %p2054_p11 = scmp.eq.s32.totalorder %s1655_s28, 0 }
  0x5c   : > { %s1888_s0 = scalar_select %p1859_p2, %s1623_s20, %s83_s18  }
  0x5d   : > { %p92_p9 = por %p90_p0, %p2054_p11  ;;  %s341_s19 = sand.u32 1, %s1623_s20  }
  0x5e   : > { %s1227_s16 = sshll.u32 %s1651_s27, 10  ;;  %s1159_s14 = sshll.u32 %s341_s19, 6 }
  0x5f   : > { %s350_s7 = scalar_lea.hbm %s2015_s3, %s1227_s16  ;;  %p1899_p4 = pnand %p1256_p13, %p92_p9 }
  0x60   : > { %s343_s8 = scalar_lea.vmem [#allocation7], %s1159_s14  ;;  %s340_s5 = scalar_lea.sflag [#allocation8], %s339_s29 }
  0x61   : > { %s351_s25 = sshll.u32 %s343_s8, 4  ;;  %p1525_p2 = pneg %p1899_p4  ;;  %s352_s25 = int_to_ptr.vmem [resolvable:$true] %s351_s25 }
  0x62   : > { %s1536_s17 = scalar_lea.vmem %s352_s25, 1024  ;;  %s1665_s21 = smov [#allocation7]  }
  0x63   : > { %p1537_p5 = scmp.ne.s32.totalorder %s352_s25, %s1536_s17  ;;  %s1541_s9 = sshll.u32 %s1665_s21, 4  ;;  %s1542_s9 = int_to_ptr.vmem [resolvable:$false] %s1541_s9 }
  0x64   : > { %s1543_s24 = scalar_lea.vmem %s1542_s9, 2048  ;;  %p1544_p1 = scmp.lt.s32.totalorder %s352_s25, %s1542_s9 }
  0x65   : > { %p1539_p7 = pnand %p1537_p5, %p1525_p2  ;;  %p1545_p13 = scmp.lt.s32.totalorder %s1543_s24, %s1536_s17 }
  0x67   : > { %p1540_p6 = pneg %p1539_p7  ;;  %p1546_p8 = por %p1545_p13, %p1544_p1 }
  0x69   : > { %p1547_p3 = pnand %p1546_p8, %p1540_p6 }
  0x6b   : > { %1550 = shalt.err (!%p1547_p3)
}
  0x6c   : > { %s1666_s18 = smov 256   ;;  %s1667_s19 = smov 16  }
  0x6d   : > { %1253 = dma.hbm_to_vmem [thread:$0]  (!%p1899_p4), %s350_s7, 1024, %s352_s25, %s340_s5, %s1666_s18, %s1666_s18, %s1667_s19  }
  0x6e   : > { %372 = sbr.rel (%p1804_p12) target bundleno = 724 (0x2d4), region = 52  ;;  %s374_s29 = sand.u32 (!%p1804_p12), 1, %s1631_s22  }
  0x6f   : > { %s1910_s16 = sshll.u32 (!%p1804_p12), %s374_s29, 4  ;;  %s375_s14 = scalar_lea.sflag (!%p1804_p12), [#allocation6], %s374_s29 }
  0x70   : > { %s378_s10 = scalar_lea.vmem (!%p1804_p12), [#allocation5], %s1910_s16 }
  0x73   : > { %1598 = dma.done.wait (%p1794_p10), %s375_s14, 256  }
  0x74   : > { %1600 = vsyncadd (%p1794_p10), %s375_s14, 4294967040  ;;  %s2056_s4 = sadd.s32 4294967295, %s1655_s28   ;;  %s385_s13 = sand.u32 1, %s1619_s1  }
  0x75   : > { %s383_s2 = sand.u32 1, %s2056_s4   ;;  %s1165_s7 = sshll.u32 %s385_s13, 6 }
  0x76   : > { %s384_s8 = scalar_lea.sflag [#allocation8], %s383_s2  ;;  %s1920_s25 = scalar_lea.vmem [#allocation7], %s1165_s7 }
  0x77   : > { %p2057_p12 = scmp.ne.s32.totalorder %s2044_s12, 0 }
  0x79   : > { %1602 = dma.done.wait (%p2057_p12), %s384_s8, 1024  }
  0x7a   : > { %1604 = vsyncadd (%p2057_p12), %s384_s8, 4294966272  ;;  %p2058_p0 = scmp.ne.s32.totalorder %s2042_s30, 0 }
  0x7c   : > { %1606 = dma.done.wait (%p2058_p0), [#allocation8], 2048  }
  0x7d   : > { %1608 = vsyncadd (%p2058_p0), [#allocation8], 4294965248 }
  0x7e   : > { %1610 = dma.done.wait (%p2058_p0), [#allocation11], 4096  }
  0x7f   : > { %1612 = vsyncadd (%p2058_p0), [#allocation11], 4294963200  ;;  %v1668_v0 = vmov 0   ;;  %v1357_v1 = vld [vmem:[#allocation9 + $0x74] ss:$8 sps:$4 sm:$0xff]   ;;  %v483_v51 = vlaneseq  ;;  %s2059_s17 = sld [smem:[#allocation25_spill]] }
  0x80   : > { %617 = vmatprep.mubr.bf16.mxu0 %v1668_v0  ;;  %v1359_v2 = vld [vmem:[#allocation9 + $0x70] ss:$8 sps:$4 sm:$0xff]   ;;  %585 = vmatprep.subr.bf16.mxu0 %v1357_v1  ;;  %v1360_v3 = vld [vmem:[#allocation9 + $0x64] ss:$8 sps:$4 sm:$0xff]   ;;  %v1362_v4 = vld [vmem:[#allocation9 + $0x60] ss:$8 sps:$4 sm:$0xff]  }
  0x81   : > { %586 = vmatpush1.bf16.msra.mxu0 %v1359_v2  ;;  %v1363_v5 = vld [vmem:[#allocation9 + $0x54] ss:$8 sps:$4 sm:$0xff]   ;;  %v1365_v6 = vld [vmem:[#allocation9 + $0x50] ss:$8 sps:$4 sm:$0xff]   ;;  %v1366_v7 = vld [vmem:[#allocation9 + $0x44] ss:$8 sps:$4 sm:$0xff]  }
  0x82   : > { %587 = vmatprep.subr.bf16.mxu0 %v1360_v3  ;;  %v1368_v8 = vld [vmem:[#allocation9 + $0x40] ss:$8 sps:$4 sm:$0xff]   ;;  %v1369_v9 = vld [vmem:[#allocation9 + $0x34] ss:$8 sps:$4 sm:$0xff]   ;;  %v1385_v11 = vld [vmem:[#allocation10 + $0x70] ss:$8 sps:$4 sm:$0xff]  }
  0x83   : > { %v1383_v10 = vld [vmem:[#allocation10 + $0x74] ss:$8 sps:$4 sm:$0xff]   ;;  %v1386_v12 = vld [vmem:[#allocation10 + $0x64] ss:$8 sps:$4 sm:$0xff]   ;;  %v1371_v13 = vld [vmem:[#allocation9 + $0x30] ss:$8 sps:$4 sm:$0xff]  }
  0x84   : > { %854 = vmatprep.subr.bf16.mxu1 %v1383_v10  ;;  %v1372_v14 = vld [vmem:[#allocation9 + $0x24] ss:$8 sps:$4 sm:$0xff]   ;;  %v1388_v15 = vld [vmem:[#allocation10 + $0x60] ss:$8 sps:$4 sm:$0xff]   ;;  %v1389_v16 = vld [vmem:[#allocation10 + $0x54] ss:$8 sps:$4 sm:$0xff]  }
  0x85   : > { %588 = vmatpush1.bf16.msra.mxu0 %v1362_v4  ;;  %855 = vmatpush1.bf16.msra.mxu1 %v1385_v11  ;;  %v1374_v17 = vld [vmem:[#allocation9 + $0x20] ss:$8 sps:$4 sm:$0xff]   ;;  %v1375_v18 = vld [vmem:[#allocation9 + $0x14] ss:$8 sps:$4 sm:$0xff]   ;;  %v1391_v19 = vld [vmem:[#allocation10 + $0x50] ss:$8 sps:$4 sm:$0xff]  }
  0x86   : > { %589 = vmatprep.subr.bf16.mxu0 %v1363_v5  ;;  %856 = vmatprep.subr.bf16.mxu1 %v1386_v12  ;;  %v1392_v20 = vld [vmem:[#allocation10 + $0x44] ss:$8 sps:$4 sm:$0xff]   ;;  %v1377_v21 = vld [vmem:[#allocation9 + $0x10] ss:$8 sps:$4 sm:$0xff]   ;;  %v1394_v23 = vld [vmem:[#allocation10 + $0x40] ss:$8 sps:$4 sm:$0xff]  }
  0x87   : > { %v1378_v22 = vld [vmem:[#allocation9 + $0x4] ss:$8 sps:$4 sm:$0xff]   ;;  %v1395_v24 = vld [vmem:[#allocation10 + $0x34] ss:$8 sps:$4 sm:$0xff]   ;;  %v1380_v25 = vld [vmem:[#allocation9] ss:$8 sps:$4 sm:$0xff]  }
  0x88   : > { %v1397_v26 = vld [vmem:[#allocation10 + $0x30] ss:$8 sps:$4 sm:$0xff]   ;;  %v1398_v27 = vld [vmem:[#allocation10 + $0x24] ss:$8 sps:$4 sm:$0xff]   ;;  %v1400_v29 = vld [vmem:[#allocation10 + $0x20] ss:$8 sps:$4 sm:$0xff]  }
  0x89   : > { %590 = vmatpush1.bf16.msra.mxu0 %v1365_v6  ;;  %857 = vmatpush1.bf16.msra.mxu1 %v1388_v15  ;;  %v1381_v28 = vld [vmem:[%s378_s10] sm:$0xff]   ;;  %v1382_v33 = vld [vmem:[%s378_s10 + $0x8] sm:$0xff]   ;;  %v484_v52 = vshrl.u32 %v483_v51, 7  ;;  %s2060_s24 = sld [smem:[#allocation26_spill]]  ;;  %vm999_vm0 = vcmask 7168  }
  0x8a   : > { %591 = vmatprep.subr.bf16.mxu0 %v1366_v7  ;;  %858 = vmatprep.subr.bf16.mxu1 %v1389_v16  ;;  %v1401_v30 = vld [vmem:[#allocation10 + $0x14] ss:$8 sps:$4 sm:$0xff]   ;;  %v1403_v31 = vld [vmem:[#allocation10 + $0x10] ss:$8 sps:$4 sm:$0xff]   ;;  %v1404_v32 = vld [vmem:[#allocation10 + $0x4] ss:$8 sps:$4 sm:$0xff]  }
  0x8b   : > { %v1406_v34 = vld [vmem:[#allocation10] ss:$8 sps:$4 sm:$0xff]   ;;  %v1407_v35 = vld [vmem:[#allocation10 + $0xf4] ss:$8 sps:$4 sm:$0xff]   ;;  %v1409_v36 = vld [vmem:[#allocation10 + $0xf0] ss:$8 sps:$4 sm:$0xff]  }
  0x8c   : > { %v1410_v37 = vld [vmem:[#allocation10 + $0xe4] ss:$8 sps:$4 sm:$0xff]   ;;  %v1412_v38 = vld [vmem:[#allocation10 + $0xe0] ss:$8 sps:$4 sm:$0xff]   ;;  %v1413_v39 = vld [vmem:[#allocation10 + $0xd4] ss:$8 sps:$4 sm:$0xff]  }
  0x8d   : > { %592 = vmatpush1.bf16.msra.mxu0 %v1368_v8  ;;  %859 = vmatpush1.bf16.msra.mxu1 %v1391_v19  ;;  %v1415_v40 = vld [vmem:[#allocation10 + $0xd0] ss:$8 sps:$4 sm:$0xff]   ;;  %v1416_v41 = vld [vmem:[#allocation10 + $0xc4] ss:$8 sps:$4 sm:$0xff]   ;;  %v1418_v42 = vld [vmem:[#allocation10 + $0xc0] ss:$8 sps:$4 sm:$0xff]  }
  0x8e   : > { %593 = vmatprep.subr.bf16.mxu0 %v1369_v9  ;;  %860 = vmatprep.subr.bf16.mxu1 %v1392_v20  ;;  %v1419_v43 = vld [vmem:[#allocation10 + $0xb4] ss:$8 sps:$4 sm:$0xff]   ;;  %v1421_v44 = vld [vmem:[#allocation10 + $0xb0] ss:$8 sps:$4 sm:$0xff]   ;;  %v1422_v45 = vld [vmem:[#allocation10 + $0xa4] ss:$8 sps:$4 sm:$0xff]  }
  0x8f   : > { %v1424_v46 = vld [vmem:[#allocation10 + $0xa0] ss:$8 sps:$4 sm:$0xff]   ;;  %v1425_v47 = vld [vmem:[#allocation10 + $0x94] ss:$8 sps:$4 sm:$0xff]   ;;  %v1427_v48 = vld [vmem:[#allocation10 + $0x90] ss:$8 sps:$4 sm:$0xff]  }
  0x90   : > { %v1428_v49 = vld [vmem:[#allocation10 + $0x84] ss:$8 sps:$4 sm:$0xff]   ;;  %v1430_v50 = vld [vmem:[#allocation10 + $0x80] ss:$8 sps:$4 sm:$0xff]   ;;  %v1938_v53 = vsub.s32 0, %v484_v52  ;;  %v1943_v55 = vsub.s32 1, %v484_v52 }
  0x91   : > { %594 = vmatpush1.bf16.msra.mxu0 %v1371_v13  ;;  %861 = vmatpush1.bf16.msra.mxu1 %v1394_v23  ;;  %v481_v54 = vld [vmem:[%s2018_s6] sm:$0x3]  ;;  %v917_v6 = vld [vmem:[%s1920_s25 + $0x10] sm:$0xff]  ;;  %v918_v9 = vld [vmem:[%s1920_s25 + $0x18] sm:$0xff]  ;;  %s2061_s18 = sld [smem:[#allocation18_spill]] }
  0x92   : > { %595 = vmatprep.subr.bf16.mxu0 %v1372_v14  ;;  %862 = vmatprep.subr.bf16.mxu1 %v1395_v24  ;;  %v486_v56 = vrot.slane %v481_v54, %v1938_v53  ;;  %v490_v57 = vrot.slane %v481_v54, %v1943_v55  ;;  %v915_v3 = vld [vmem:[%s1920_s25] sm:$0xff]  ;;  %v920_v24 = vld [vmem:[%s1920_s25 + $0x28] sm:$0xff]  ;;  %s2062_s19 = sld [smem:[#allocation17_spill]] }
  0x93   : > { %v919_v23 = vld [vmem:[%s1920_s25 + $0x20] sm:$0xff]  ;;  %s2063_s8 = sld [smem:[#allocation22_spill]] }
  0x94   : > { %s993_s30 = sld [smem:[#allocation4]] }
  0x95   : > { %596 = vmatpush1.bf16.msra.mxu0 %v1374_v17  ;;  %863 = vmatpush1.bf16.msra.mxu1 %v1397_v26 }
  0x96   : > { %597 = vmatprep.subr.bf16.mxu0 %v1375_v18  ;;  %864 = vmatprep.subr.bf16.mxu1 %v1398_v27 }
  0x97   : > { %s1168_s29 = sshll.u32 %s2061_s18, 2 }
  0x98   : > { %p445_p10 = scmp.lt.s32.totalorder %s1168_s29, 7  ;;  %s1170_s16 = sshll.u32 %s2062_s19, 1 }
  0x99   : > { %598 = vmatpush1.bf16.msra.mxu0 %v1377_v21  ;;  %865 = vmatpush1.bf16.msra.mxu1 %v1400_v29  ;;  %s451_s14 = sadd.s32 %s2061_s18, %s1170_s16  ;;  %s983_s2 = sld [smem:[#allocation3 + %s2062_s19]] }
  0x9a   : > { %599 = vmatprep.subr.bf16.mxu0 %v1378_v22  ;;  %866 = vmatprep.subr.bf16.mxu1 %v1401_v30  ;;  %s2084_s29 = smov (!%p445_p10, %s1168_s29), 7  ;;  %s1171_s4 = sshll.u32 %s451_s14, 2 }
  0x9b   : > { %s1169_s10 = sshll.u32 %s2084_s29, 3  ;;  %p453_p11 = scmp.lt.s32.totalorder %s1171_s4, 31 }
  0x9d   : > { %600 = vmatpush1.bf16.msra.mxu0 %v1380_v25  ;;  %867 = vmatpush1.bf16.msra.mxu1 %v1403_v31  ;;  %s2086_s4 = smov (!%p453_p11, %s1171_s4), 31 }
  0x9e   : > { %868 = vmatprep.subr.bf16.mxu1 %v1404_v32  ;;  %s1172_s11 = sshll.u32 %s2086_s4, 3 }
  0xa0   : > { %618 = vmatmul.mubr.bf16.vlgmr.msra.gmra.mxu0 %v1381_v28 }
  0xa1   : > { %627 = vmatprep.mubr.bf16.mxu0 %v1668_v0  ;;  %869 = vmatpush1.bf16.msra.mxu1 %v1406_v34  ;;  %v916_v0 = vld [vmem:[%s1920_s25 + $0x8] sm:$0xff]  ;;  %v922_v34 = vld [vmem:[%s1920_s25 + $0x38] sm:$0xff] }
  0xa2   : > { %870 = vmatprep.subr.bf16.mxu1 %v1407_v35 }
  0xa5   : > { %871 = vmatpush2.bf16.msra.mxu1 %v1409_v36 }
  0xa6   : > { %872 = vmatprep.subr.bf16.mxu1 %v1410_v37 }
  0xa8   : > { %628 = vmatmul.mubr.bf16.gmra.mxu0 %v1382_v33  ;;  %v921_v33 = vld [vmem:[%s1920_s25 + $0x30] sm:$0xff]  ;;  %s448_s25 = scalar_lea.vmem %s2063_s8, %s1169_s10 }
  0xa9   : > { %873 = vmatpush2.bf16.msra.mxu1 %v1412_v38 }
  0xaa   : > { %874 = vmatprep.subr.bf16.mxu1 %v1413_v39 }
  0xad   : > { %875 = vmatpush2.bf16.msra.mxu1 %v1415_v40 }
  0xae   : > { %876 = vmatprep.subr.bf16.mxu1 %v1416_v41 }
  0xb1   : > { %877 = vmatpush2.bf16.msra.mxu1 %v1418_v42  ;;  %v682_v42 = vld [vmem:[%s2059_s17] sm:$0x3]  ;;  %s2064_s17 = sld [smem:[#allocation27_spill]] }
  0xb2   : > { %878 = vmatprep.subr.bf16.mxu1 %v1419_v43  ;;  %v687_v43 = vrot.slane %v682_v42, %v1938_v53 }
  0xb5   : > { %879 = vmatpush2.bf16.msra.mxu1 %v1421_v44  ;;  %v691_v44 = vrot.slane %v682_v42, %v1943_v55 }
  0xb6   : > { %880 = vmatprep.subr.bf16.mxu1 %v1422_v45 }
  0xb7   : > { %s456_s21 = scalar_lea.vmem %s2064_s17, %s1172_s11 }
  0xb9   : > { %881 = vmatpush2.bf16.msra.mxu1 %v1424_v46  ;;  %v951_v46 = vld [vmem:[%s2060_s24] sm:$0x3] }
  0xba   : > { %882 = vmatprep.subr.bf16.mxu1 %v1425_v47  ;;  %v960_v52 = vrot.slane %v951_v46, %v1943_v55 }
  0xbd   : > { %883 = vmatpush2.bf16.msra.mxu1 %v1427_v48 }
  0xbe   : > { %884 = vmatprep.subr.bf16.mxu1 %v1428_v49 }
  0xc1   : > { %885 = vmatpush2.bf16.msra.mxu1 %v1430_v50  ;;  %v956_v50 = vrot.slane %v951_v46, %v1938_v53 }
 0x160   : > { %v619_v58 = vpop.f32.mrf.mxu0 }
 0x161   : > { %v620_v59 = vadd.f32 %v619_v58, %v486_v56 }
 0x162   : > { %v621_v60 = vpop.f32.mrf.mxu0 }
 0x163   : > { %v622_v61 = vadd.f32 %v621_v60, %v490_v57  ;;  %v638_v62 = vmax.f32 %v620_v59, 0.0 }
 0x164   : > { %v623_v63 = vpop.f32.mrf.mxu0 }
 0x165   : > { %v639_v1 = vmax.f32 %v622_v61, 0.0  ;;  %v624_v2 = vadd.f32 %v623_v63, %v486_v56  ;;  %v923_v11 = vmul.f32 %v915_v3, %v638_v62 }
 0x166   : > { %v625_v4 = vpop.f32.mrf.mxu0 }
 0x167   : > { %v640_v5 = vmax.f32 %v624_v2, 0.0  ;;  %v626_v7 = vadd.f32 %v625_v4, %v490_v57  ;;  %v924_v8 = vmul.f32 %v916_v0, %v639_v1 }
 0x168   : > { %v629_v10 = vpop.f32.mrf.mxu0 }
 0x169   : > { %v641_v12 = vmax.f32 %v626_v7, 0.0  ;;  %v630_v13 = vadd.f32 %v629_v10, %v486_v56  ;;  %v925_v14 = vmul.f32 %v917_v6, %v640_v5  ;;  %v931_v16 = vadd.f32 %v924_v8, %v923_v11 }
 0x16a   : > { %v631_v15 = vpop.f32.mrf.mxu0  ;;  %v646_v21 = vpack.c.bf16 %v640_v5, %v638_v62 }
 0x16b   : > { %v926_v17 = vmul.f32 %v918_v9, %v641_v12  ;;  %v642_v18 = vmax.f32 %v630_v13, 0.0  ;;  %v632_v19 = vadd.f32 %v631_v15, %v490_v57  ;;  %v647_v20 = vpack.c.bf16 %v641_v12, %v639_v1  ;;  %932 = vadd.xlane.f32.xlu0 %v931_v16 }
 0x16c   : > { %v633_v22 = vpop.f32.mrf.mxu0 }
 0x16d   : > { %v643_v25 = vmax.f32 %v632_v19, 0.0  ;;  %v634_v26 = vadd.f32 %v633_v22, %v486_v56  ;;  %886 = vmatprep.mubr.bf16.mxu1 %v647_v20  ;;  %v934_v27 = vadd.f32 %v926_v17, %v925_v14  ;;  %v927_v31 = vmul.f32 %v919_v23, %v642_v18 }
 0x16e   : > { %v635_v28 = vpop.f32.mrf.mxu0  ;;  %887 = vmatmul.mubr.bf16.vlgmr.msra.gmra.mxu1 %v646_v21  ;;  %v943_v21 = vld [vmem:[%s448_s25] sm:$0xff] }
 0x16f   : > { %v644_v29 = vmax.f32 %v634_v26, 0.0  ;;  %v636_v30 = vadd.f32 %v635_v28, %v490_v57  ;;  %v928_v32 = vmul.f32 %v920_v24, %v643_v25  ;;  %935 = vadd.xlane.f32.xlu0 %v934_v27  ;;  %v944_v24 = vld [vmem:[%s448_s25 + $0x8] sm:$0xff]  ;;  %v984_v26 = vstv %s983_s2 }
 0x171   : > { %v645_v35 = vmax.f32 %v636_v30, 0.0  ;;  %v937_v36 = vadd.f32 %v928_v32, %v927_v31  ;;  %v929_v37 = vmul.f32 %v921_v33, %v644_v29  ;;  %v648_v40 = vpack.c.bf16 %v644_v29, %v642_v18  ;;  %v945_v29 = vld [vmem:[%s448_s25 + $0x10] sm:$0xff] }
 0x172   : > { %v994_v31 = vstv %s993_s30 }
 0x173   : > { %v649_v38 = vpack.c.bf16 %v645_v35, %v643_v25  ;;  %v930_v39 = vmul.f32 %v922_v34, %v645_v35  ;;  %938 = vadd.xlane.f32.xlu1 %v937_v36 }
 0x175   : > { %896 = vmatprep.mubr.bf16.mxu1 %v649_v38  ;;  %v940_v41 = vadd.f32 %v930_v39, %v929_v37  ;;  %v946_v37 = vld [vmem:[%s448_s25 + $0x18] sm:$0xff] }
 0x176   : > { %897 = vmatmul.mubr.bf16.gmra.mxu1 %v648_v40 }
 0x177   : > { %941 = vadd.xlane.f32.xlu1 %v940_v41 }
 0x1f4   : > { %v933_v20 = vpop.xlane.xlu0 %932 }
 0x1f5   : > { %v947_v23 = vadd.f32 %v943_v21, %v933_v20 }
 0x1f7   : > { %v985_v28 = vmul.f32 %v984_v26, %v947_v23 }
 0x1f8   : > { %v936_v25 = vpop.xlane.xlu0 %935 }
 0x1f9   : > { %v948_v27 = vadd.f32 %v944_v24, %v936_v25 }
 0x1fb   : > { %v986_v36 = vmul.f32 %v984_v26, %v948_v27 }
 0x1fc   : > { %v939_v22 = vpop.xlane.xlu1 %938 }
 0x1fd   : > { %v949_v34 = vadd.f32 %v945_v29, %v939_v22 }
 0x1ff   : > { %v987_v42 = vmul.f32 %v984_v26, %v949_v34 }
 0x200   : > { %v942_v30 = vpop.xlane.xlu1 %941 }
 0x201   : > { %v950_v40 = vadd.f32 %v946_v37, %v942_v30 }
 0x203   : > { %v988_v46 = vmul.f32 %v984_v26, %v950_v40 }
 0x22e   : > { %v888_v45 = vpop.f32.mrf.mxu1 }
 0x22f   : > { %v889_v47 = vadd.f32 %v888_v45, %v687_v43 }
 0x230   : > { %v890_v48 = vpop.f32.mrf.mxu1 }
 0x231   : > { %v907_v49 = vmax.f32 %v889_v47, 0.0  ;;  %v891_v51 = vadd.f32 %v890_v48, %v691_v44 }
 0x232   : > { %v892_v54 = vpop.f32.mrf.mxu1 }
 0x233   : > { %v908_v56 = vmax.f32 %v891_v51, 0.0  ;;  %v893_v57 = vadd.f32 %v892_v54, %v687_v43  ;;  %v963_v59 = vmul.f32 %v956_v50, %v907_v49 }
 0x234   : > { %v894_v58 = vpop.f32.mrf.mxu1 }
 0x235   : > { %v964_v60 = vmul.f32 %v960_v52, %v908_v56  ;;  %v909_v61 = vmax.f32 %v893_v57, 0.0  ;;  %v895_v62 = vadd.f32 %v894_v58, %v691_v44 }
 0x236   : > { %v898_v63 = vpop.f32.mrf.mxu1 }
 0x237   : > { %v910_v0 = vmax.f32 %v895_v62, 0.0  ;;  %v899_v1 = vadd.f32 %v898_v63, %v687_v43  ;;  %v971_v2 = vadd.f32 %v964_v60, %v963_v59  ;;  %v965_v4 = vmul.f32 %v956_v50, %v909_v61 }
 0x238   : > { %v900_v3 = vpop.f32.mrf.mxu1 }
 0x239   : > { %v966_v5 = vmul.f32 %v960_v52, %v910_v0  ;;  %v911_v6 = vmax.f32 %v899_v1, 0.0  ;;  %v901_v53 = vadd.f32 %v900_v3, %v691_v44  ;;  %972 = vadd.xlane.f32.xlu0 %v971_v2 }
 0x23a   : > { %v902_v7 = vpop.f32.mrf.mxu1 }
 0x23b   : > { %v912_v55 = vmax.f32 %v901_v53, 0.0  ;;  %v903_v8 = vadd.f32 %v902_v7, %v687_v43  ;;  %v974_v9 = vadd.f32 %v966_v5, %v965_v4  ;;  %v967_v11 = vmul.f32 %v956_v50, %v911_v6 }
 0x23c   : > { %v904_v10 = vpop.f32.mrf.mxu1 }
 0x23d   : > { %v968_v12 = vmul.f32 %v960_v52, %v912_v55  ;;  %v913_v13 = vmax.f32 %v903_v8, 0.0  ;;  %v905_v14 = vadd.f32 %v904_v10, %v691_v44  ;;  %975 = vadd.xlane.f32.xlu1 %v974_v9 }
 0x23f   : > { %v914_v15 = vmax.f32 %v905_v14, 0.0  ;;  %v977_v16 = vadd.f32 %v968_v12, %v967_v11  ;;  %v969_v17 = vmul.f32 %v956_v50, %v913_v13 }
 0x241   : > { %v970_v18 = vmul.f32 %v960_v52, %v914_v15  ;;  %978 = vadd.xlane.f32.xlu0 %v977_v16 }
 0x243   : > { %v980_v19 = vadd.f32 %v970_v18, %v969_v17 }
 0x245   : > { %981 = vadd.xlane.f32.xlu1 %v980_v19 }
 0x2c2   : > { %v973_v32 = vpop.xlane.xlu0 %972 }
 0x2c3   : > { %v989_v33 = vadd.f32 %v985_v28, %v973_v32 }
 0x2c5   : > { %v995_v35 = vadd.f32 %v994_v31, %v989_v33 }
 0x2c6   : > { %v976_v38 = vpop.xlane.xlu1 %975 }
 0x2c7   : > { %1000 = vst.msk [vmem:[%s456_s21] sm:$0xff] %vm999_vm0, %v995_v35  ;;  %v990_v39 = vadd.f32 %v986_v36, %v976_v38 }
 0x2c9   : > { %v996_v41 = vadd.f32 %v994_v31, %v990_v39 }
 0x2ca   : > { %v979_v43 = vpop.xlane.xlu0 %978 }
 0x2cb   : > { %1001 = vst.msk [vmem:[%s456_s21 + $0x8] sm:$0xff] %vm999_vm0, %v996_v41  ;;  %v991_v44 = vadd.f32 %v987_v42, %v979_v43 }
 0x2cd   : > { %v997_v45 = vadd.f32 %v994_v31, %v991_v44 }
 0x2ce   : > { %v982_v47 = vpop.xlane.xlu1 %981 }
 0x2cf   : > { %1002 = vst.msk [vmem:[%s456_s21 + $0x10] sm:$0xff] %vm999_vm0, %v997_v45  ;;  %v992_v48 = vadd.f32 %v988_v46, %v982_v47 }
 0x2d1   : > { %v998_v49 = vadd.f32 %v994_v31, %v992_v48 }
 0x2d3   : > { %1003 = vst.msk [vmem:[%s456_s21 + $0x18] sm:$0xff] %vm999_vm0, %v998_v49 }
 0x2d4 PF: > { %s34_s28 = sadd.s32 1, %s1655_s28   ;;  %s2065_s9 = smov %s1888_s0 }
 0x2d5   : > { %p31_p9 = scmp.ge.s32.totalorder %s34_s28, 10   ;;  %s2066_s24 = sld [smem:[#allocation19_spill]] }
 0x2d6   : > { %s2067_s18 = sld [smem:[#allocation20_spill]]  ;;  %s2068_s0 = smov %s1619_s1 }
 0x2d7   : > { %s2069_s1 = smov %s1623_s20  ;;  %s2070_s20 = smov %s2065_s9 }
 0x2d8   : > { %s2071_s21 = smov %s1631_s22  ;;  %s2072_s22 = smov %s1635_s23 }
 0x2d9   : > { %s2073_s23 = smov %s1864_s26  ;;  %s2074_s25 = smov %s1651_s27 }
 0x2da   : > { %s2076_s27 = smov %s2082_s15  ;;  %33 = sbr.rel (!%p31_p9) target bundleno = 27 (0x1b), region = 116 }
 0x2dc   : > { %s2075_s26 = smov %s2067_s18 }
 0x2df   :  { %1032 = vsyncpa [#allocation6], 1 }
 0x2e0   :  { %1034 = vsyncpa [#allocation6 + $0x1], 1 }
 0x2e1   :  { %1035 = vsyncpa [#allocation8], 1 }
 0x2e2   :  { %1037 = vsyncpa [#allocation8 + $0x1], 1 }
 0x2e3   :  { %1038 = vsyncpa [#allocation11], 1 }

</bundles_post_ra>
